<compile_context>
chip_gen: v5e
topology: v5e:2x2
jax: 0.10.0
libtpu: 0.0.40
codegen_flags: <defaults>
</compile_context>

<pallas_src>
import jax
import jax.numpy as jnp
from jax.experimental import pallas as pl
from jax.experimental.pallas import tpu as pltpu


# ----------------------------------------------------------------------------
# Config (small, GPT-2-like)
# ----------------------------------------------------------------------------
VOCAB = 64
N_EMBD = 32
N_HEAD = 4
HEAD_DIM = N_EMBD // N_HEAD
N_LAYER = 2
N_INNER = 4 * N_EMBD          # GPT-2 MLP inner dim
N_POSITIONS = 16
LN_EPS = 1e-5
NEG_INF = -1e9
OUT_W = 128                   # lane-dense fused output: [logits(64) | hidden(32) | pad(32)]


# ----------------------------------------------------------------------------
# Fused forward megakernel (single grid step; whole batch processed as one slab)
# ----------------------------------------------------------------------------
def _fused_forward_kernel(ids_ref, mask_ref, tab_ref, wa_ref, wb_ref,
                          bias_ref, const_ref, outw_ref, out_ref):
    f32 = jnp.float32
    D, H = N_EMBD, N_HEAD
    BS = ids_ref.shape[0]          # B * S rows stacked along sublanes
    HBS = H * BS

    tab = tab_ref[...]             # (VOCAB + 2D + BS, D): emb | adapter_w1 | adapter_w2 | wpe
    bias = bias_ref[...]           # (8, 128) packed biases / LN params
    const = const_ref[...]         # (2*HBS + D + BS, HBS): bd_sum | bd_k | bd_v | causal_batch
    wa = wa_ref[...]               # (L, D, 8D): [c_attn(Q pre-scaled) | c_proj | mlp_w1]
    wb = wb_ref[...]               # (L, 4D, D): mlp_w2

    def layernorm(x, g, b):
        mu = jnp.mean(x, axis=-1, keepdims=True)
        var = jnp.mean(jnp.square(x - mu), axis=-1, keepdims=True)
        return (x - mu) * jax.lax.rsqrt(var + LN_EPS) * g + b

    # ---- 1. token embedding gather: exact one-hot matmul on the MXU ---------
    ids = ids_ref[...]                                                        # (BS, 1) int32
    onehot = (ids == jax.lax.broadcasted_iota(jnp.int32, (BS, VOCAB), 1)).astype(f32)
    e = jnp.dot(onehot, tab[0:VOCAB, :], preferred_element_type=f32)          # (BS, D)

    # ---- 2. adapter: Linear(D,D/2) -> ReLU -> Linear(D/2,D) -----------------
    # Weights lane-padded to width D; padded columns stay exactly zero (b1 pad = 0, relu(0)=0,
    # zero rows in padded w2), so the result equals the un-padded adapter exactly.
    a = jnp.dot(e, tab[VOCAB:VOCAB + D, :], preferred_element_type=f32) + bias[0:1, 0:D]
    a = jnp.maximum(a, 0.0)
    a = jnp.dot(a, tab[VOCAB + D:VOCAB + 2 * D, :], preferred_element_type=f32)

    # ---- 3. + positional embeddings (wpe[:S] pre-tiled, adapter_b2 pre-folded)
    x = a + tab[VOCAB + 2 * D:VOCAB + 2 * D + BS, :]                          # (BS, D)

    # ---- attention bias: constant causal + batch-block part + per-call padding
    # (can reach -2e9 where a key is both future and padded; harmless in f32)
    pad = (1.0 - mask_ref[...]) * NEG_INF                                     # (1, BS)
    cb = const[2 * HBS + D:2 * HBS + D + BS, 0:BS]                            # (BS, BS)
    attn_bias = jnp.tile(cb + pad, (1, H))                                    # (BS, HBS)

    bd_sum = const[0:HBS, 0:HBS]          # block-diag ones: per-head softmax denominators
    bd_k = const[HBS:HBS + D, 0:HBS]      # block-diag K selector (merged-head layout)
    bd_v = const[HBS + D:2 * HBS + D, 0:D]  # block-diag V selector

    for l in range(N_LAYER):                                                  # unrolled at trace
        wl = wa[l]                                                            # (D, 8D)

        # ---- attention: merged-head scores[q, h*BS + k], one MXU call per contraction
        h = layernorm(x, bias[1 + l:2 + l, 0:32], bias[1 + l:2 + l, 32:64])
        qkv = jnp.dot(h, wl[:, 0:3 * D], preferred_element_type=f32) + bias[3 + l:4 + l, 0:3 * D]
        q = qkv[:, 0:D]               # 1/sqrt(Dh) already folded into Wq / bq at pack time
        k = qkv[:, D:2 * D]
        v = qkv[:, 2 * D:3 * D]
        k_cat = jnp.tile(k.T, (1, H)) * bd_k                                  # (D, HBS)
        scores = jnp.dot(q, k_cat, preferred_element_type=f32) + attn_bias    # (BS, HBS)
        # Shared row max across all heads: mathematically equivalent to per-head max,
        # slightly less robust if per-head score magnitudes diverge (fine at this scale).
        m = jnp.max(scores, axis=-1, keepdims=True)
        p = jnp.exp(scores - m)
        denom = jnp.dot(p, bd_sum, preferred_element_type=f32)                # per-head sums
        p = p * pl.reciprocal(denom + 1e-20, approx=True)                     # EUP, ~1e-4 rel err
        v_cat = jnp.tile(v, (H, 1)) * bd_v                                    # (HBS, D)
        attn = jnp.dot(p, v_cat, preferred_element_type=f32)                  # (BS, D)
        attn = (jnp.dot(attn, wl[:, 3 * D:4 * D], preferred_element_type=f32)
                + bias[3 + l:4 + l, 96:128])
        x = x + attn

        # ---- MLP
        h2 = layernorm(x, bias[1 + l:2 + l, 64:96], bias[1 + l:2 + l, 96:128])
        mh = (jnp.dot(h2, wl[:, 4 * D:4 * D + N_INNER], preferred_element_type=f32)
              + bias[5 + l:6 + l, 0:N_INNER])
        mh = jax.nn.gelu(mh, approximate=True)                                # GPT-2 gelu_new
        mo = jnp.dot(mh, wb[l], preferred_element_type=f32) + bias[7:8, D * l:D * l + D]
        x = x + mo

    # ---- 4. final LN, then ONE lane-dense matmul producing [logits | hidden | 0]
    x = layernorm(x, bias[0:1, 32:64], bias[0:1, 64:96])
    out_ref[...] = jnp.dot(x, outw_ref[...], preferred_element_type=f32)      # (BS, 128)


# ----------------------------------------------------------------------------
# Raw parameter init (deterministic, GPT-2-style: normal(0, 0.02), zero biases)
# ----------------------------------------------------------------------------
def init_params(key):
    def nrm(k, shape):
        return 0.02 * jax.random.normal(k, shape, dtype=jnp.float32)

    ks = iter(jax.random.split(key, 16))
    wte = nrm(next(ks), (VOCAB, N_EMBD))                       # tied lm_head weight
    return {
        "new_embeddings": nrm(next(ks), (VOCAB, N_EMBD)),
        "adapter_w1": nrm(next(ks), (N_EMBD, N_EMBD // 2)),
        "adapter_b1": jnp.zeros((1, N_EMBD // 2), jnp.float32),
        "adapter_w2": nrm(next(ks), (N_EMBD // 2, N_EMBD)),
        "adapter_b2": jnp.zeros((1, N_EMBD), jnp.float32),
        "wpe": nrm(next(ks), (N_POSITIONS, N_EMBD)),
        "ln1_g": jnp.ones((N_LAYER, N_EMBD), jnp.float32),
        "ln1_b": jnp.zeros((N_LAYER, N_EMBD), jnp.float32),
        "attn_w": nrm(next(ks), (N_LAYER, N_EMBD, 3 * N_EMBD)),    # c_attn
        "attn_b": jnp.zeros((N_LAYER, 3 * N_EMBD), jnp.float32),
        "proj_w": nrm(next(ks), (N_LAYER, N_EMBD, N_EMBD)),        # c_proj
        "proj_b": jnp.zeros((N_LAYER, N_EMBD), jnp.float32),
        "ln2_g": jnp.ones((N_LAYER, N_EMBD), jnp.float32),
        "ln2_b": jnp.zeros((N_LAYER, N_EMBD), jnp.float32),
        "mlp_w1": nrm(next(ks), (N_LAYER, N_EMBD, N_INNER)),       # c_fc
        "mlp_b1": jnp.zeros((N_LAYER, N_INNER), jnp.float32),
        "mlp_w2": nrm(next(ks), (N_LAYER, N_INNER, N_EMBD)),       # c_proj
        "mlp_b2": jnp.zeros((N_LAYER, N_EMBD), jnp.float32),
        "ln_f_g": jnp.ones((1, N_EMBD), jnp.float32),
        "ln_f_b": jnp.zeros((1, N_EMBD), jnp.float32),
        "lm_head_w": wte.T,                                        # (N_EMBD, VOCAB) pre-transposed
    }


# ----------------------------------------------------------------------------
# One-time packing of raw params into a handful of VMEM slabs (shape-specialized to (B, S)).
# Folds: 1/sqrt(Dh) into Q columns of c_attn; adapter_b2 into (pre-tiled) wpe.
# ----------------------------------------------------------------------------
def pack_params(params, B, S):
    assert S <= N_POSITIONS
    f32 = jnp.float32
    D = N_EMBD
    BS = B * S
    HBS = N_HEAD * BS
    scale = 1.0 / (HEAD_DIM ** 0.5)

    # tab: [emb_table | adapter_w1 (cols padded to D) | adapter_w2 (rows padded to D) | wpe_tiled]
    tab = jnp.zeros((VOCAB + 2 * D + BS, D), f32)
    tab = tab.at[0:VOCAB, :].set(params["new_embeddings"])
    tab = tab.at[VOCAB:VOCAB + D, 0:D // 2].set(params["adapter_w1"])
    tab = tab.at[VOCAB + D:VOCAB + D + D // 2, :].set(params["adapter_w2"])
    wpe_tiled = jnp.tile(params["wpe"][:S] + params["adapter_b2"], (B, 1))
    tab = tab.at[VOCAB + 2 * D:, :].set(wpe_tiled)

    # per-layer weight slab: [c_attn (Q cols pre-scaled) | c_proj | mlp_w1]  -> (L, D, 8D)
    attn_w = params["attn_w"].at[:, :, 0:D].multiply(scale)
    wa = jnp.concatenate([attn_w, params["proj_w"], params["mlp_w1"]], axis=-1)
    wb = params["mlp_w2"]                                                   # (L, 4D, D)

    # bias / LN slab (8, 128)
    bias = jnp.zeros((8, 128), f32)
    bias = bias.at[0, 0:D // 2].set(params["adapter_b1"][0])
    bias = bias.at[0, 32:64].set(params["ln_f_g"][0])
    bias = bias.at[0, 64:96].set(params["ln_f_b"][0])
    attn_b = params["attn_b"].at[:, 0:D].multiply(scale)
    for l in range(N_LAYER):
        bias = bias.at[1 + l, 0:32].set(params["ln1_g"][l])
        bias = bias.at[1 + l, 32:64].set(params["ln1_b"][l])
        bias = bias.at[1 + l, 64:96].set(params["ln2_g"][l])
        bias = bias.at[1 + l, 96:128].set(params["ln2_b"][l])
        bias = bias.at[3 + l, 0:96].set(attn_b[l])
        bias = bias.at[3 + l, 96:128].set(params["proj_b"][l])
        bias = bias.at[5 + l, 0:128].set(params["mlp_b1"][l])
        bias = bias.at[7, D * l:D * l + D].set(params["mlp_b2"][l])

    # constants slab: bd_sum | bd_k | bd_v | causal+batch bias (all compile-time constants)
    def blockmask(rows, cols, rg, cg):
        r = (jnp.arange(rows) // rg)[:, None]
        c = (jnp.arange(cols) // cg)[None, :]
        return (r == c).astype(f32)

    bd_sum = blockmask(HBS, HBS, BS, BS)
    bd_k = blockmask(D, HBS, HEAD_DIM, BS)
    bd_v = blockmask(HBS, D, BS, HEAD_DIM)
    idx = jnp.arange(BS)
    bq, sq = idx // S, idx % S
    cb = jnp.where((bq[:, None] == bq[None, :]) & (sq[None, :] <= sq[:, None]),
                   0.0, NEG_INF).astype(f32)
    const = jnp.zeros((2 * HBS + D + BS, HBS), f32)
    const = const.at[0:HBS, :].set(bd_sum)
    const = const.at[HBS:HBS + D, :].set(bd_k)
    const = const.at[HBS + D:2 * HBS + D, 0:D].set(bd_v)
    const = const.at[2 * HBS + D:, 0:BS].set(cb)

    # lane-dense output projection: [tied lm_head | identity (hidden passthrough) | zeros]
    outw = jnp.zeros((D, OUT_W), f32)
    outw = outw.at[:, 0:VOCAB].set(params["lm_head_w"])
    outw = outw.at[:, VOCAB:VOCAB + D].set(jnp.eye(D, dtype=f32))

    return {"tab": tab, "wa": wa, "wb": wb, "bias": bias, "const": const, "outw": outw}


# ----------------------------------------------------------------------------
# Forward pass (single fused pallas_call, single grid step)
# ----------------------------------------------------------------------------
@jax.jit
def _forward_impl(packed, input_ids, attention_mask):
    B, S = input_ids.shape
    BS = B * S
    ids2 = input_ids.reshape(BS, 1).astype(jnp.int32)              # tiny host-side layout glue
    mask2 = attention_mask.astype(jnp.float32).reshape(1, BS)

    zero2 = lambda i: (0, 0)
    zero3 = lambda i: (0, 0, 0)

    out = pl.pallas_call(
        _fused_forward_kernel,
        out_shape=jax.ShapeDtypeStruct((BS, OUT_W), jnp.float32),
        grid=(1,),
        in_specs=[
            pl.BlockSpec((BS, 1), zero2),                           # input_ids
            pl.BlockSpec((1, BS), zero2),                           # attention_mask
            pl.BlockSpec(packed["tab"].shape, zero2),               # emb | adapter | wpe
            pl.BlockSpec(packed["wa"].shape, zero3),                # per-layer weight slab
            pl.BlockSpec(packed["wb"].shape, zero3),                # mlp_w2
            pl.BlockSpec(packed["bias"].shape, zero2),              # biases / LN params
            pl.BlockSpec(packed["const"].shape, zero2),             # selectors + causal/batch bias
            pl.BlockSpec(packed["outw"].shape, zero2),              # [lm_head | I | 0]
        ],
        out_specs=pl.BlockSpec((BS, OUT_W), zero2),
        compiler_params=pltpu.CompilerParams(dimension_semantics=("arbitrary",)),
    )(ids2, mask2, packed["tab"], packed["wa"], packed["wb"],
      packed["bias"], packed["const"], packed["outw"])

    logits = out[:, 0:VOCAB].reshape(B, S, VOCAB)
    hidden = out[:, VOCAB:VOCAB + N_EMBD].reshape(B, S, N_EMBD)
    return {"logits": logits, "last_hidden_state": hidden}


def forward(packed, input_ids, attention_mask=None):
    if attention_mask is None:
        attention_mask = jnp.ones(input_ids.shape, jnp.float32)
    return _forward_impl(packed, input_ids, attention_mask)


# ----------------------------------------------------------------------------
# Pure-JAX reference (same math, standard multi-head layout) for validation
# ----------------------------------------------------------------------------
def reference_forward(params, input_ids, attention_mask):
    B, S = input_ids.shape
    emb = jnp.take(params["new_embeddings"], input_ids, axis=0)
    a = jnp.maximum(emb @ params["adapter_w1"] + params["adapter_b1"], 0.0)
    a = a @ params["adapter_w2"] + params["adapter_b2"]
    x = a + params["wpe"][:S][None]

    add = ((1.0 - attention_mask.astype(jnp.float32)) * NEG_INF)[:, None, None, :]
    causal = jnp.tril(jnp.ones((S, S), jnp.float32))
    cbias = jnp.where(causal > 0, 0.0, NEG_INF)

    def ln(x, g, b):
        mu = x.mean(-1, keepdims=True)
        var = ((x - mu) ** 2).mean(-1, keepdims=True)
        return (x - mu) * jax.lax.rsqrt(var + LN_EPS) * g + b

    for l in range(N_LAYER):
        h = ln(x, params["ln1_g"][l], params["ln1_b"][l])
        qkv = h @ params["attn_w"][l] + params["attn_b"][l]
        q, k, v = jnp.split(qkv, 3, axis=-1)
        q = q.reshape(B, S, N_HEAD, HEAD_DIM).transpose(0, 2, 1, 3)
        k = k.reshape(B, S, N_HEAD, HEAD_DIM).transpose(0, 2, 1, 3)
        v = v.reshape(B, S, N_HEAD, HEAD_DIM).transpose(0, 2, 1, 3)
        s = jnp.einsum("bhqd,bhkd->bhqk", q, k) / (HEAD_DIM ** 0.5)
        s = s + cbias[None, None] + add
        p = jax.nn.softmax(s, axis=-1)
        o = jnp.einsum("bhqk,bhkd->bhqd", p, v).transpose(0, 2, 1, 3).reshape(B, S, N_EMBD)
        x = x + o @ params["proj_w"][l] + params["proj_b"][l]
        h2 = ln(x, params["ln2_g"][l], params["ln2_b"][l])
        m = jax.nn.gelu(h2 @ params["mlp_w1"][l] + params["mlp_b1"][l], approximate=True)
        x = x + m @ params["mlp_w2"][l] + params["mlp_b2"][l]

    x = ln(x, params["ln_f_g"], params["ln_f_b"])
    logits = x @ params["lm_head_w"]
    return logits, x


# ----------------------------------------------------------------------------
# Main
# ----------------------------------------------------------------------------
if __name__ == "__main__":
    key = jax.random.PRNGKey(0)
    k_params, k_ids = jax.random.split(key)

    params = init_params(k_params)

    B, S = 2, 8
    packed = pack_params(params, B, S)

    input_ids = jax.random.randint(k_ids, (B, S), 0, VOCAB, dtype=jnp.int32)
    attention_mask = jnp.ones((B, S), jnp.float32).at[1, S - 2:].set(0.0)  # pad tail of batch 1

    out = forward(packed, input_ids, attention_mask)
    jax.block_until_ready(out)

    assert out["logits"].shape == (B, S, VOCAB)
    assert out["last_hidden_state"].shape == (B, S, N_EMBD)
    assert bool(jnp.all(jnp.isfinite(out["logits"])))

    ref_logits, ref_hidden = reference_forward(params, input_ids, attention_mask)
    assert bool(jnp.allclose(out["logits"], ref_logits, atol=2e-3, rtol=2e-2))
    assert bool(jnp.allclose(out["last_hidden_state"], ref_hidden, atol=2e-3, rtol=2e-2))

    print("KERNEL_OK")
</pallas_src>

<mosaic_0001>
module attributes {stable_mosaic.version = 11 : i64} {
  func.func @_fused_forward_kernel(%arg0: i32, %arg1: memref<16x1xi32, #tpu.memory_space<vmem>>, %arg2: memref<1x16xf32, #tpu.memory_space<vmem>>, %arg3: memref<144x32xf32, #tpu.memory_space<vmem>>, %arg4: memref<2x32x256xf32, #tpu.memory_space<vmem>>, %arg5: memref<2x128x32xf32, #tpu.memory_space<vmem>>, %arg6: memref<8x128xf32, #tpu.memory_space<vmem>>, %arg7: memref<176x64xf32, #tpu.memory_space<vmem>>, %arg8: memref<32x128xf32, #tpu.memory_space<vmem>>, %arg9: memref<16x128xf32, #tpu.memory_space<vmem>>) attributes {dimension_semantics = [#tpu.dimension_semantics<arbitrary>], iteration_bounds = array<i64: 1>, scalar_prefetch = 0 : i64, scratch_operands = 0 : i64, tpu.core_type = #tpu.core_type<tc>, window_params = [{pipeline_mode = #tpu.pipeline_mode<synchronous>, transform_indices = @transform_0, window_bounds = array<i64: 16, 1>}, {pipeline_mode = #tpu.pipeline_mode<synchronous>, transform_indices = @transform_1, window_bounds = array<i64: 1, 16>}, {pipeline_mode = #tpu.pipeline_mode<synchronous>, transform_indices = @transform_2, window_bounds = array<i64: 144, 32>}, {pipeline_mode = #tpu.pipeline_mode<synchronous>, transform_indices = @transform_3, window_bounds = array<i64: 2, 32, 256>}, {pipeline_mode = #tpu.pipeline_mode<synchronous>, transform_indices = @transform_4, window_bounds = array<i64: 2, 128, 32>}, {pipeline_mode = #tpu.pipeline_mode<synchronous>, transform_indices = @transform_5, window_bounds = array<i64: 8, 128>}, {pipeline_mode = #tpu.pipeline_mode<synchronous>, transform_indices = @transform_6, window_bounds = array<i64: 176, 64>}, {pipeline_mode = #tpu.pipeline_mode<synchronous>, transform_indices = @transform_7, window_bounds = array<i64: 32, 128>}, {pipeline_mode = #tpu.pipeline_mode<synchronous>, transform_indices = @transform_8, window_bounds = array<i64: 16, 128>}]} {
    %c0 = arith.constant 0 : index
    %c0_0 = arith.constant 0 : index
    %0 = vector.load %arg3[%c0, %c0_0] : memref<144x32xf32, #tpu.memory_space<vmem>>, vector<144x32xf32>
    %c0_1 = arith.constant 0 : index
    %c0_2 = arith.constant 0 : index
    %1 = vector.load %arg6[%c0_1, %c0_2] : memref<8x128xf32, #tpu.memory_space<vmem>>, vector<8x128xf32>
    %c0_3 = arith.constant 0 : index
    %c0_4 = arith.constant 0 : index
    %2 = vector.load %arg7[%c0_3, %c0_4] : memref<176x64xf32, #tpu.memory_space<vmem>>, vector<176x64xf32>
    %c0_5 = arith.constant 0 : index
    %c0_6 = arith.constant 0 : index
    %c0_7 = arith.constant 0 : index
    %3 = vector.load %arg4[%c0_5, %c0_6, %c0_7] : memref<2x32x256xf32, #tpu.memory_space<vmem>>, vector<2x32x256xf32>
    %c0_8 = arith.constant 0 : index
    %c0_9 = arith.constant 0 : index
    %c0_10 = arith.constant 0 : index
    %4 = vector.load %arg5[%c0_8, %c0_9, %c0_10] : memref<2x128x32xf32, #tpu.memory_space<vmem>>, vector<2x128x32xf32>
    %c0_11 = arith.constant 0 : index
    %c0_12 = arith.constant 0 : index
    %5 = vector.load %arg1[%c0_11, %c0_12] : memref<16x1xi32, #tpu.memory_space<vmem>>, vector<16x1xi32>
    %6 = tpu.iota {dimensions = array<i32: 1>} : vector<16x64xi32>
    %7 = vector.broadcast %5 : vector<16x1xi32> to vector<16x64xi32>
    %8 = arith.cmpi eq, %7, %6 : vector<16x64xi32>
    %9 = arith.extui %8 : vector<16x64xi1> to vector<16x64xi32>
    %10 = arith.sitofp %9 : vector<16x64xi32> to vector<16x64xf32>
    %11 = vector.extract_strided_slice %0 {offsets = [0, 0], sizes = [64, 32], strides = [1, 1]} : vector<144x32xf32> to vector<64x32xf32>
    %cst = arith.constant dense<0.000000e+00> : vector<16x32xf32>
    %12 = tpu.matmul %10, %11, %cst {dimension_numbers = #tpu.dot_dimension_numbers<[1], [0], [0], [1], [0, 0, 1, 1], [], []>} : vector<16x64xf32>, vector<64x32xf32>, vector<16x32xf32> -> vector<16x32xf32>
    %13 = vector.extract_strided_slice %0 {offsets = [64, 0], sizes = [32, 32], strides = [1, 1]} : vector<144x32xf32> to vector<32x32xf32>
    %cst_13 = arith.constant dense<0.000000e+00> : vector<16x32xf32>
    %14 = tpu.matmul %12, %13, %cst_13 {dimension_numbers = #tpu.dot_dimension_numbers<[1], [0], [0], [1], [0, 0, 1, 1], [], []>} : vector<16x32xf32>, vector<32x32xf32>, vector<16x32xf32> -> vector<16x32xf32>
    %15 = vector.extract_strided_slice %1 {offsets = [0, 0], sizes = [1, 32], strides = [1, 1]} : vector<8x128xf32> to vector<1x32xf32>
    %16 = vector.broadcast %15 : vector<1x32xf32> to vector<16x32xf32>
    %17 = arith.addf %14, %16 : vector<16x32xf32>
    %cst_14 = arith.constant 0.000000e+00 : f32
    %18 = vector.broadcast %cst_14 : f32 to vector<16x32xf32>
    %19 = arith.maximumf %17, %18 : vector<16x32xf32>
    %20 = vector.extract_strided_slice %0 {offsets = [96, 0], sizes = [32, 32], strides = [1, 1]} : vector<144x32xf32> to vector<32x32xf32>
    %cst_15 = arith.constant dense<0.000000e+00> : vector<16x32xf32>
    %21 = tpu.matmul %19, %20, %cst_15 {dimension_numbers = #tpu.dot_dimension_numbers<[1], [0], [0], [1], [0, 0, 1, 1], [], []>} : vector<16x32xf32>, vector<32x32xf32>, vector<16x32xf32> -> vector<16x32xf32>
    %22 = vector.extract_strided_slice %0 {offsets = [128, 0], sizes = [16, 32], strides = [1, 1]} : vector<144x32xf32> to vector<16x32xf32>
    %23 = arith.addf %21, %22 : vector<16x32xf32>
    %c0_16 = arith.constant 0 : index
    %c0_17 = arith.constant 0 : index
    %24 = vector.load %arg2[%c0_16, %c0_17] : memref<1x16xf32, #tpu.memory_space<vmem>>, vector<1x16xf32>
    %cst_18 = arith.constant 1.000000e+00 : f32
    %25 = vector.broadcast %cst_18 : f32 to vector<1x16xf32>
    %26 = arith.subf %25, %24 : vector<1x16xf32>
    %cst_19 = arith.constant -1.000000e+09 : f32
    %27 = vector.broadcast %cst_19 : f32 to vector<1x16xf32>
    %28 = arith.mulf %26, %27 : vector<1x16xf32>
    %29 = vector.extract_strided_slice %2 {offsets = [160, 0], sizes = [16, 16], strides = [1, 1]} : vector<176x64xf32> to vector<16x16xf32>
    %30 = vector.broadcast %28 : vector<1x16xf32> to vector<16x16xf32>
    %31 = arith.addf %29, %30 : vector<16x16xf32>
    %32 = tpu.concatenate %31, %31, %31, %31 in 1 : vector<16x16xf32>, vector<16x16xf32>, vector<16x16xf32>, vector<16x16xf32> -> vector<16x64xf32>
    %33 = vector.extract_strided_slice %2 {offsets = [0, 0], sizes = [64, 64], strides = [1, 1]} : vector<176x64xf32> to vector<64x64xf32>
    %34 = vector.extract_strided_slice %2 {offsets = [64, 0], sizes = [32, 64], strides = [1, 1]} : vector<176x64xf32> to vector<32x64xf32>
    %35 = vector.extract_strided_slice %2 {offsets = [96, 0], sizes = [64, 32], strides = [1, 1]} : vector<176x64xf32> to vector<64x32xf32>
    %36 = vector.extract_strided_slice %3 {offsets = [0, 0, 0], sizes = [1, 32, 256], strides = [1, 1, 1]} : vector<2x32x256xf32> to vector<1x32x256xf32>
    %37 = vector.shape_cast %36 : vector<1x32x256xf32> to vector<32x256xf32>
    %38 = vector.extract_strided_slice %1 {offsets = [1, 0], sizes = [1, 32], strides = [1, 1]} : vector<8x128xf32> to vector<1x32xf32>
    %39 = vector.extract_strided_slice %1 {offsets = [1, 32], sizes = [1, 32], strides = [1, 1]} : vector<8x128xf32> to vector<1x32xf32>
    %cst_20 = arith.constant dense<0.000000e+00> : vector<16xf32>
    %40 = vector.multi_reduction <add>, %23, %cst_20 [1] : vector<16x32xf32> to vector<16xf32>
    %41 = vector.shape_cast %40 : vector<16xf32> to vector<16x1xf32>
    %cst_21 = arith.constant 3.200000e+01 : f32
    %42 = vector.broadcast %cst_21 : f32 to vector<16x1xf32>
    %43 = arith.divf %41, %42 : vector<16x1xf32>
    %44 = vector.broadcast %43 : vector<16x1xf32> to vector<16x32xf32>
    %45 = arith.subf %23, %44 : vector<16x32xf32>
    %46 = arith.mulf %45, %45 : vector<16x32xf32>
    %cst_22 = arith.constant dense<0.000000e+00> : vector<16xf32>
    %47 = vector.multi_reduction <add>, %46, %cst_22 [1] : vector<16x32xf32> to vector<16xf32>
    %48 = vector.shape_cast %47 : vector<16xf32> to vector<16x1xf32>
    %cst_23 = arith.constant 3.200000e+01 : f32
    %49 = vector.broadcast %cst_23 : f32 to vector<16x1xf32>
    %50 = arith.divf %48, %49 : vector<16x1xf32>
    %51 = vector.broadcast %43 : vector<16x1xf32> to vector<16x32xf32>
    %52 = arith.subf %23, %51 : vector<16x32xf32>
    %cst_24 = arith.constant 9.99999974E-6 : f32
    %53 = vector.broadcast %cst_24 : f32 to vector<16x1xf32>
    %54 = arith.addf %50, %53 : vector<16x1xf32>
    %55 = math.rsqrt %54 : vector<16x1xf32>
    %56 = vector.broadcast %55 : vector<16x1xf32> to vector<16x32xf32>
    %57 = arith.mulf %52, %56 : vector<16x32xf32>
    %58 = vector.broadcast %38 : vector<1x32xf32> to vector<16x32xf32>
    %59 = arith.mulf %57, %58 : vector<16x32xf32>
    %60 = vector.broadcast %39 : vector<1x32xf32> to vector<16x32xf32>
    %61 = arith.addf %59, %60 : vector<16x32xf32>
    %62 = vector.extract_strided_slice %37 {offsets = [0, 0], sizes = [32, 96], strides = [1, 1]} : vector<32x256xf32> to vector<32x96xf32>
    %cst_25 = arith.constant dense<0.000000e+00> : vector<16x96xf32>
    %63 = tpu.matmul %61, %62, %cst_25 {dimension_numbers = #tpu.dot_dimension_numbers<[1], [0], [0], [1], [0, 0, 1, 1], [], []>} : vector<16x32xf32>, vector<32x96xf32>, vector<16x96xf32> -> vector<16x96xf32>
    %64 = vector.extract_strided_slice %1 {offsets = [3, 0], sizes = [1, 96], strides = [1, 1]} : vector<8x128xf32> to vector<1x96xf32>
    %65 = vector.broadcast %64 : vector<1x96xf32> to vector<16x96xf32>
    %66 = arith.addf %63, %65 : vector<16x96xf32>
    %67 = vector.extract_strided_slice %66 {offsets = [0, 0], sizes = [16, 32], strides = [1, 1]} : vector<16x96xf32> to vector<16x32xf32>
    %68 = vector.extract_strided_slice %66 {offsets = [0, 32], sizes = [16, 32], strides = [1, 1]} : vector<16x96xf32> to vector<16x32xf32>
    %69 = vector.extract_strided_slice %66 {offsets = [0, 64], sizes = [16, 32], strides = [1, 1]} : vector<16x96xf32> to vector<16x32xf32>
    %70 = tpu.transpose %68, [1, 0] : vector<16x32xf32> -> vector<32x16xf32>
    %71 = tpu.concatenate %70, %70, %70, %70 in 1 : vector<32x16xf32>, vector<32x16xf32>, vector<32x16xf32>, vector<32x16xf32> -> vector<32x64xf32>
    %72 = arith.mulf %71, %34 : vector<32x64xf32>
    %cst_26 = arith.constant dense<0.000000e+00> : vector<16x64xf32>
    %73 = tpu.matmul %67, %72, %cst_26 {dimension_numbers = #tpu.dot_dimension_numbers<[1], [0], [0], [1], [0, 0, 1, 1], [], []>} : vector<16x32xf32>, vector<32x64xf32>, vector<16x64xf32> -> vector<16x64xf32>
    %74 = arith.addf %73, %32 : vector<16x64xf32>
    %cst_27 = arith.constant dense<0xFF800000> : vector<16xf32>
    %75 = vector.multi_reduction <maximumf>, %74, %cst_27 [1] : vector<16x64xf32> to vector<16xf32>
    %76 = vector.shape_cast %75 : vector<16xf32> to vector<16x1xf32>
    %77 = vector.broadcast %76 : vector<16x1xf32> to vector<16x64xf32>
    %78 = arith.subf %74, %77 : vector<16x64xf32>
    %79 = math.exp %78 : vector<16x64xf32>
    %cst_28 = arith.constant dense<0.000000e+00> : vector<16x64xf32>
    %80 = tpu.matmul %79, %33, %cst_28 {dimension_numbers = #tpu.dot_dimension_numbers<[1], [0], [0], [1], [0, 0, 1, 1], [], []>} : vector<16x64xf32>, vector<64x64xf32>, vector<16x64xf32> -> vector<16x64xf32>
    %cst_29 = arith.constant 9.99999968E-21 : f32
    %81 = vector.broadcast %cst_29 : f32 to vector<16x64xf32>
    %82 = arith.addf %80, %81 : vector<16x64xf32>
    %83 = tpu.reciprocal %82 {approx = true} : vector<16x64xf32> -> vector<16x64xf32>
    %84 = arith.mulf %79, %83 : vector<16x64xf32>
    %85 = tpu.concatenate %69, %69, %69, %69 in 0 : vector<16x32xf32>, vector<16x32xf32>, vector<16x32xf32>, vector<16x32xf32> -> vector<64x32xf32>
    %86 = arith.mulf %85, %35 : vector<64x32xf32>
    %cst_30 = arith.constant dense<0.000000e+00> : vector<16x32xf32>
    %87 = tpu.matmul %84, %86, %cst_30 {dimension_numbers = #tpu.dot_dimension_numbers<[1], [0], [0], [1], [0, 0, 1, 1], [], []>} : vector<16x64xf32>, vector<64x32xf32>, vector<16x32xf32> -> vector<16x32xf32>
    %88 = vector.extract_strided_slice %37 {offsets = [0, 96], sizes = [32, 32], strides = [1, 1]} : vector<32x256xf32> to vector<32x32xf32>
    %cst_31 = arith.constant dense<0.000000e+00> : vector<16x32xf32>
    %89 = tpu.matmul %87, %88, %cst_31 {dimension_numbers = #tpu.dot_dimension_numbers<[1], [0], [0], [1], [0, 0, 1, 1], [], []>} : vector<16x32xf32>, vector<32x32xf32>, vector<16x32xf32> -> vector<16x32xf32>
    %90 = vector.extract_strided_slice %1 {offsets = [3, 96], sizes = [1, 32], strides = [1, 1]} : vector<8x128xf32> to vector<1x32xf32>
    %91 = vector.broadcast %90 : vector<1x32xf32> to vector<16x32xf32>
    %92 = arith.addf %89, %91 : vector<16x32xf32>
    %93 = arith.addf %23, %92 : vector<16x32xf32>
    %94 = vector.extract_strided_slice %1 {offsets = [1, 64], sizes = [1, 32], strides = [1, 1]} : vector<8x128xf32> to vector<1x32xf32>
    %95 = vector.extract_strided_slice %1 {offsets = [1, 96], sizes = [1, 32], strides = [1, 1]} : vector<8x128xf32> to vector<1x32xf32>
    %cst_32 = arith.constant dense<0.000000e+00> : vector<16xf32>
    %96 = vector.multi_reduction <add>, %93, %cst_32 [1] : vector<16x32xf32> to vector<16xf32>
    %97 = vector.shape_cast %96 : vector<16xf32> to vector<16x1xf32>
    %cst_33 = arith.constant 3.200000e+01 : f32
    %98 = vector.broadcast %cst_33 : f32 to vector<16x1xf32>
    %99 = arith.divf %97, %98 : vector<16x1xf32>
    %100 = vector.broadcast %99 : vector<16x1xf32> to vector<16x32xf32>
    %101 = arith.subf %93, %100 : vector<16x32xf32>
    %102 = arith.mulf %101, %101 : vector<16x32xf32>
    %cst_34 = arith.constant dense<0.000000e+00> : vector<16xf32>
    %103 = vector.multi_reduction <add>, %102, %cst_34 [1] : vector<16x32xf32> to vector<16xf32>
    %104 = vector.shape_cast %103 : vector<16xf32> to vector<16x1xf32>
    %cst_35 = arith.constant 3.200000e+01 : f32
    %105 = vector.broadcast %cst_35 : f32 to vector<16x1xf32>
    %106 = arith.divf %104, %105 : vector<16x1xf32>
    %107 = vector.broadcast %99 : vector<16x1xf32> to vector<16x32xf32>
    %108 = arith.subf %93, %107 : vector<16x32xf32>
    %cst_36 = arith.constant 9.99999974E-6 : f32
    %109 = vector.broadcast %cst_36 : f32 to vector<16x1xf32>
    %110 = arith.addf %106, %109 : vector<16x1xf32>
    %111 = math.rsqrt %110 : vector<16x1xf32>
    %112 = vector.broadcast %111 : vector<16x1xf32> to vector<16x32xf32>
    %113 = arith.mulf %108, %112 : vector<16x32xf32>
    %114 = vector.broadcast %94 : vector<1x32xf32> to vector<16x32xf32>
    %115 = arith.mulf %113, %114 : vector<16x32xf32>
    %116 = vector.broadcast %95 : vector<1x32xf32> to vector<16x32xf32>
    %117 = arith.addf %115, %116 : vector<16x32xf32>
    %118 = vector.extract_strided_slice %37 {offsets = [0, 128], sizes = [32, 128], strides = [1, 1]} : vector<32x256xf32> to vector<32x128xf32>
    %cst_37 = arith.constant dense<0.000000e+00> : vector<16x128xf32>
    %119 = tpu.matmul %117, %118, %cst_37 {dimension_numbers = #tpu.dot_dimension_numbers<[1], [0], [0], [1], [0, 0, 1, 1], [], []>} : vector<16x32xf32>, vector<32x128xf32>, vector<16x128xf32> -> vector<16x128xf32>
    %120 = vector.extract_strided_slice %1 {offsets = [5, 0], sizes = [1, 128], strides = [1, 1]} : vector<8x128xf32> to vector<1x128xf32>
    %121 = vector.broadcast %120 : vector<1x128xf32> to vector<16x128xf32>
    %122 = arith.addf %119, %121 : vector<16x128xf32>
    %123 = arith.mulf %122, %122 : vector<16x128xf32>
    %124 = arith.mulf %122, %123 : vector<16x128xf32>
    %cst_38 = arith.constant 4.471500e-02 : f32
    %125 = vector.broadcast %cst_38 : f32 to vector<16x128xf32>
    %126 = arith.mulf %125, %124 : vector<16x128xf32>
    %127 = arith.addf %122, %126 : vector<16x128xf32>
    %cst_39 = arith.constant 0.797884583 : f32
    %128 = vector.broadcast %cst_39 : f32 to vector<16x128xf32>
    %129 = arith.mulf %128, %127 : vector<16x128xf32>
    %130 = math.tanh %129 : vector<16x128xf32>
    %cst_40 = arith.constant 1.000000e+00 : f32
    %131 = vector.broadcast %cst_40 : f32 to vector<16x128xf32>
    %132 = arith.addf %131, %130 : vector<16x128xf32>
    %cst_41 = arith.constant 5.000000e-01 : f32
    %133 = vector.broadcast %cst_41 : f32 to vector<16x128xf32>
    %134 = arith.mulf %133, %132 : vector<16x128xf32>
    %135 = arith.mulf %122, %134 : vector<16x128xf32>
    %136 = vector.extract_strided_slice %4 {offsets = [0, 0, 0], sizes = [1, 128, 32], strides = [1, 1, 1]} : vector<2x128x32xf32> to vector<1x128x32xf32>
    %137 = vector.shape_cast %136 : vector<1x128x32xf32> to vector<128x32xf32>
    %cst_42 = arith.constant dense<0.000000e+00> : vector<16x32xf32>
    %138 = tpu.matmul %135, %137, %cst_42 {dimension_numbers = #tpu.dot_dimension_numbers<[1], [0], [0], [1], [0, 0, 1, 1], [], []>} : vector<16x128xf32>, vector<128x32xf32>, vector<16x32xf32> -> vector<16x32xf32>
    %139 = vector.extract_strided_slice %1 {offsets = [7, 0], sizes = [1, 32], strides = [1, 1]} : vector<8x128xf32> to vector<1x32xf32>
    %140 = vector.broadcast %139 : vector<1x32xf32> to vector<16x32xf32>
    %141 = arith.addf %138, %140 : vector<16x32xf32>
    %142 = arith.addf %93, %141 : vector<16x32xf32>
    %143 = vector.extract_strided_slice %3 {offsets = [1, 0, 0], sizes = [1, 32, 256], strides = [1, 1, 1]} : vector<2x32x256xf32> to vector<1x32x256xf32>
    %144 = vector.shape_cast %143 : vector<1x32x256xf32> to vector<32x256xf32>
    %145 = vector.extract_strided_slice %1 {offsets = [2, 0], sizes = [1, 32], strides = [1, 1]} : vector<8x128xf32> to vector<1x32xf32>
    %146 = vector.extract_strided_slice %1 {offsets = [2, 32], sizes = [1, 32], strides = [1, 1]} : vector<8x128xf32> to vector<1x32xf32>
    %cst_43 = arith.constant dense<0.000000e+00> : vector<16xf32>
    %147 = vector.multi_reduction <add>, %142, %cst_43 [1] : vector<16x32xf32> to vector<16xf32>
    %148 = vector.shape_cast %147 : vector<16xf32> to vector<16x1xf32>
    %cst_44 = arith.constant 3.200000e+01 : f32
    %149 = vector.broadcast %cst_44 : f32 to vector<16x1xf32>
    %150 = arith.divf %148, %149 : vector<16x1xf32>
    %151 = vector.broadcast %150 : vector<16x1xf32> to vector<16x32xf32>
    %152 = arith.subf %142, %151 : vector<16x32xf32>
    %153 = arith.mulf %152, %152 : vector<16x32xf32>
    %cst_45 = arith.constant dense<0.000000e+00> : vector<16xf32>
    %154 = vector.multi_reduction <add>, %153, %cst_45 [1] : vector<16x32xf32> to vector<16xf32>
    %155 = vector.shape_cast %154 : vector<16xf32> to vector<16x1xf32>
    %cst_46 = arith.constant 3.200000e+01 : f32
    %156 = vector.broadcast %cst_46 : f32 to vector<16x1xf32>
    %157 = arith.divf %155, %156 : vector<16x1xf32>
    %158 = vector.broadcast %150 : vector<16x1xf32> to vector<16x32xf32>
    %159 = arith.subf %142, %158 : vector<16x32xf32>
    %cst_47 = arith.constant 9.99999974E-6 : f32
    %160 = vector.broadcast %cst_47 : f32 to vector<16x1xf32>
    %161 = arith.addf %157, %160 : vector<16x1xf32>
    %162 = math.rsqrt %161 : vector<16x1xf32>
    %163 = vector.broadcast %162 : vector<16x1xf32> to vector<16x32xf32>
    %164 = arith.mulf %159, %163 : vector<16x32xf32>
    %165 = vector.broadcast %145 : vector<1x32xf32> to vector<16x32xf32>
    %166 = arith.mulf %164, %165 : vector<16x32xf32>
    %167 = vector.broadcast %146 : vector<1x32xf32> to vector<16x32xf32>
    %168 = arith.addf %166, %167 : vector<16x32xf32>
    %169 = vector.extract_strided_slice %144 {offsets = [0, 0], sizes = [32, 96], strides = [1, 1]} : vector<32x256xf32> to vector<32x96xf32>
    %cst_48 = arith.constant dense<0.000000e+00> : vector<16x96xf32>
    %170 = tpu.matmul %168, %169, %cst_48 {dimension_numbers = #tpu.dot_dimension_numbers<[1], [0], [0], [1], [0, 0, 1, 1], [], []>} : vector<16x32xf32>, vector<32x96xf32>, vector<16x96xf32> -> vector<16x96xf32>
    %171 = vector.extract_strided_slice %1 {offsets = [4, 0], sizes = [1, 96], strides = [1, 1]} : vector<8x128xf32> to vector<1x96xf32>
    %172 = vector.broadcast %171 : vector<1x96xf32> to vector<16x96xf32>
    %173 = arith.addf %170, %172 : vector<16x96xf32>
    %174 = vector.extract_strided_slice %173 {offsets = [0, 0], sizes = [16, 32], strides = [1, 1]} : vector<16x96xf32> to vector<16x32xf32>
    %175 = vector.extract_strided_slice %173 {offsets = [0, 32], sizes = [16, 32], strides = [1, 1]} : vector<16x96xf32> to vector<16x32xf32>
    %176 = vector.extract_strided_slice %173 {offsets = [0, 64], sizes = [16, 32], strides = [1, 1]} : vector<16x96xf32> to vector<16x32xf32>
    %177 = tpu.transpose %175, [1, 0] : vector<16x32xf32> -> vector<32x16xf32>
    %178 = tpu.concatenate %177, %177, %177, %177 in 1 : vector<32x16xf32>, vector<32x16xf32>, vector<32x16xf32>, vector<32x16xf32> -> vector<32x64xf32>
    %179 = arith.mulf %178, %34 : vector<32x64xf32>
    %cst_49 = arith.constant dense<0.000000e+00> : vector<16x64xf32>
    %180 = tpu.matmul %174, %179, %cst_49 {dimension_numbers = #tpu.dot_dimension_numbers<[1], [0], [0], [1], [0, 0, 1, 1], [], []>} : vector<16x32xf32>, vector<32x64xf32>, vector<16x64xf32> -> vector<16x64xf32>
    %181 = arith.addf %180, %32 : vector<16x64xf32>
    %cst_50 = arith.constant dense<0xFF800000> : vector<16xf32>
    %182 = vector.multi_reduction <maximumf>, %181, %cst_50 [1] : vector<16x64xf32> to vector<16xf32>
    %183 = vector.shape_cast %182 : vector<16xf32> to vector<16x1xf32>
    %184 = vector.broadcast %183 : vector<16x1xf32> to vector<16x64xf32>
    %185 = arith.subf %181, %184 : vector<16x64xf32>
    %186 = math.exp %185 : vector<16x64xf32>
    %cst_51 = arith.constant dense<0.000000e+00> : vector<16x64xf32>
    %187 = tpu.matmul %186, %33, %cst_51 {dimension_numbers = #tpu.dot_dimension_numbers<[1], [0], [0], [1], [0, 0, 1, 1], [], []>} : vector<16x64xf32>, vector<64x64xf32>, vector<16x64xf32> -> vector<16x64xf32>
    %cst_52 = arith.constant 9.99999968E-21 : f32
    %188 = vector.broadcast %cst_52 : f32 to vector<16x64xf32>
    %189 = arith.addf %187, %188 : vector<16x64xf32>
    %190 = tpu.reciprocal %189 {approx = true} : vector<16x64xf32> -> vector<16x64xf32>
    %191 = arith.mulf %186, %190 : vector<16x64xf32>
    %192 = tpu.concatenate %176, %176, %176, %176 in 0 : vector<16x32xf32>, vector<16x32xf32>, vector<16x32xf32>, vector<16x32xf32> -> vector<64x32xf32>
    %193 = arith.mulf %192, %35 : vector<64x32xf32>
    %cst_53 = arith.constant dense<0.000000e+00> : vector<16x32xf32>
    %194 = tpu.matmul %191, %193, %cst_53 {dimension_numbers = #tpu.dot_dimension_numbers<[1], [0], [0], [1], [0, 0, 1, 1], [], []>} : vector<16x64xf32>, vector<64x32xf32>, vector<16x32xf32> -> vector<16x32xf32>
    %195 = vector.extract_strided_slice %144 {offsets = [0, 96], sizes = [32, 32], strides = [1, 1]} : vector<32x256xf32> to vector<32x32xf32>
    %cst_54 = arith.constant dense<0.000000e+00> : vector<16x32xf32>
    %196 = tpu.matmul %194, %195, %cst_54 {dimension_numbers = #tpu.dot_dimension_numbers<[1], [0], [0], [1], [0, 0, 1, 1], [], []>} : vector<16x32xf32>, vector<32x32xf32>, vector<16x32xf32> -> vector<16x32xf32>
    %197 = vector.extract_strided_slice %1 {offsets = [4, 96], sizes = [1, 32], strides = [1, 1]} : vector<8x128xf32> to vector<1x32xf32>
    %198 = vector.broadcast %197 : vector<1x32xf32> to vector<16x32xf32>
    %199 = arith.addf %196, %198 : vector<16x32xf32>
    %200 = arith.addf %142, %199 : vector<16x32xf32>
    %201 = vector.extract_strided_slice %1 {offsets = [2, 64], sizes = [1, 32], strides = [1, 1]} : vector<8x128xf32> to vector<1x32xf32>
    %202 = vector.extract_strided_slice %1 {offsets = [2, 96], sizes = [1, 32], strides = [1, 1]} : vector<8x128xf32> to vector<1x32xf32>
    %cst_55 = arith.constant dense<0.000000e+00> : vector<16xf32>
    %203 = vector.multi_reduction <add>, %200, %cst_55 [1] : vector<16x32xf32> to vector<16xf32>
    %204 = vector.shape_cast %203 : vector<16xf32> to vector<16x1xf32>
    %cst_56 = arith.constant 3.200000e+01 : f32
    %205 = vector.broadcast %cst_56 : f32 to vector<16x1xf32>
    %206 = arith.divf %204, %205 : vector<16x1xf32>
    %207 = vector.broadcast %206 : vector<16x1xf32> to vector<16x32xf32>
    %208 = arith.subf %200, %207 : vector<16x32xf32>
    %209 = arith.mulf %208, %208 : vector<16x32xf32>
    %cst_57 = arith.constant dense<0.000000e+00> : vector<16xf32>
    %210 = vector.multi_reduction <add>, %209, %cst_57 [1] : vector<16x32xf32> to vector<16xf32>
    %211 = vector.shape_cast %210 : vector<16xf32> to vector<16x1xf32>
    %cst_58 = arith.constant 3.200000e+01 : f32
    %212 = vector.broadcast %cst_58 : f32 to vector<16x1xf32>
    %213 = arith.divf %211, %212 : vector<16x1xf32>
    %214 = vector.broadcast %206 : vector<16x1xf32> to vector<16x32xf32>
    %215 = arith.subf %200, %214 : vector<16x32xf32>
    %cst_59 = arith.constant 9.99999974E-6 : f32
    %216 = vector.broadcast %cst_59 : f32 to vector<16x1xf32>
    %217 = arith.addf %213, %216 : vector<16x1xf32>
    %218 = math.rsqrt %217 : vector<16x1xf32>
    %219 = vector.broadcast %218 : vector<16x1xf32> to vector<16x32xf32>
    %220 = arith.mulf %215, %219 : vector<16x32xf32>
    %221 = vector.broadcast %201 : vector<1x32xf32> to vector<16x32xf32>
    %222 = arith.mulf %220, %221 : vector<16x32xf32>
    %223 = vector.broadcast %202 : vector<1x32xf32> to vector<16x32xf32>
    %224 = arith.addf %222, %223 : vector<16x32xf32>
    %225 = vector.extract_strided_slice %144 {offsets = [0, 128], sizes = [32, 128], strides = [1, 1]} : vector<32x256xf32> to vector<32x128xf32>
    %cst_60 = arith.constant dense<0.000000e+00> : vector<16x128xf32>
    %226 = tpu.matmul %224, %225, %cst_60 {dimension_numbers = #tpu.dot_dimension_numbers<[1], [0], [0], [1], [0, 0, 1, 1], [], []>} : vector<16x32xf32>, vector<32x128xf32>, vector<16x128xf32> -> vector<16x128xf32>
    %227 = vector.extract_strided_slice %1 {offsets = [6, 0], sizes = [1, 128], strides = [1, 1]} : vector<8x128xf32> to vector<1x128xf32>
    %228 = vector.broadcast %227 : vector<1x128xf32> to vector<16x128xf32>
    %229 = arith.addf %226, %228 : vector<16x128xf32>
    %230 = arith.mulf %229, %229 : vector<16x128xf32>
    %231 = arith.mulf %229, %230 : vector<16x128xf32>
    %cst_61 = arith.constant 4.471500e-02 : f32
    %232 = vector.broadcast %cst_61 : f32 to vector<16x128xf32>
    %233 = arith.mulf %232, %231 : vector<16x128xf32>
    %234 = arith.addf %229, %233 : vector<16x128xf32>
    %cst_62 = arith.constant 0.797884583 : f32
    %235 = vector.broadcast %cst_62 : f32 to vector<16x128xf32>
    %236 = arith.mulf %235, %234 : vector<16x128xf32>
    %237 = math.tanh %236 : vector<16x128xf32>
    %cst_63 = arith.constant 1.000000e+00 : f32
    %238 = vector.broadcast %cst_63 : f32 to vector<16x128xf32>
    %239 = arith.addf %238, %237 : vector<16x128xf32>
    %cst_64 = arith.constant 5.000000e-01 : f32
    %240 = vector.broadcast %cst_64 : f32 to vector<16x128xf32>
    %241 = arith.mulf %240, %239 : vector<16x128xf32>
    %242 = arith.mulf %229, %241 : vector<16x128xf32>
    %243 = vector.extract_strided_slice %4 {offsets = [1, 0, 0], sizes = [1, 128, 32], strides = [1, 1, 1]} : vector<2x128x32xf32> to vector<1x128x32xf32>
    %244 = vector.shape_cast %243 : vector<1x128x32xf32> to vector<128x32xf32>
    %cst_65 = arith.constant dense<0.000000e+00> : vector<16x32xf32>
    %245 = tpu.matmul %242, %244, %cst_65 {dimension_numbers = #tpu.dot_dimension_numbers<[1], [0], [0], [1], [0, 0, 1, 1], [], []>} : vector<16x128xf32>, vector<128x32xf32>, vector<16x32xf32> -> vector<16x32xf32>
    %246 = vector.extract_strided_slice %1 {offsets = [7, 32], sizes = [1, 32], strides = [1, 1]} : vector<8x128xf32> to vector<1x32xf32>
    %247 = vector.broadcast %246 : vector<1x32xf32> to vector<16x32xf32>
    %248 = arith.addf %245, %247 : vector<16x32xf32>
    %249 = arith.addf %200, %248 : vector<16x32xf32>
    %250 = vector.extract_strided_slice %1 {offsets = [0, 32], sizes = [1, 32], strides = [1, 1]} : vector<8x128xf32> to vector<1x32xf32>
    %251 = vector.extract_strided_slice %1 {offsets = [0, 64], sizes = [1, 32], strides = [1, 1]} : vector<8x128xf32> to vector<1x32xf32>
    %cst_66 = arith.constant dense<0.000000e+00> : vector<16xf32>
    %252 = vector.multi_reduction <add>, %249, %cst_66 [1] : vector<16x32xf32> to vector<16xf32>
    %253 = vector.shape_cast %252 : vector<16xf32> to vector<16x1xf32>
    %cst_67 = arith.constant 3.200000e+01 : f32
    %254 = vector.broadcast %cst_67 : f32 to vector<16x1xf32>
    %255 = arith.divf %253, %254 : vector<16x1xf32>
    %256 = vector.broadcast %255 : vector<16x1xf32> to vector<16x32xf32>
    %257 = arith.subf %249, %256 : vector<16x32xf32>
    %258 = arith.mulf %257, %257 : vector<16x32xf32>
    %cst_68 = arith.constant dense<0.000000e+00> : vector<16xf32>
    %259 = vector.multi_reduction <add>, %258, %cst_68 [1] : vector<16x32xf32> to vector<16xf32>
    %260 = vector.shape_cast %259 : vector<16xf32> to vector<16x1xf32>
    %cst_69 = arith.constant 3.200000e+01 : f32
    %261 = vector.broadcast %cst_69 : f32 to vector<16x1xf32>
    %262 = arith.divf %260, %261 : vector<16x1xf32>
    %263 = vector.broadcast %255 : vector<16x1xf32> to vector<16x32xf32>
    %264 = arith.subf %249, %263 : vector<16x32xf32>
    %cst_70 = arith.constant 9.99999974E-6 : f32
    %265 = vector.broadcast %cst_70 : f32 to vector<16x1xf32>
    %266 = arith.addf %262, %265 : vector<16x1xf32>
    %267 = math.rsqrt %266 : vector<16x1xf32>
    %268 = vector.broadcast %267 : vector<16x1xf32> to vector<16x32xf32>
    %269 = arith.mulf %264, %268 : vector<16x32xf32>
    %270 = vector.broadcast %250 : vector<1x32xf32> to vector<16x32xf32>
    %271 = arith.mulf %269, %270 : vector<16x32xf32>
    %272 = vector.broadcast %251 : vector<1x32xf32> to vector<16x32xf32>
    %273 = arith.addf %271, %272 : vector<16x32xf32>
    %c0_71 = arith.constant 0 : index
    %c0_72 = arith.constant 0 : index
    %274 = vector.load %arg8[%c0_71, %c0_72] : memref<32x128xf32, #tpu.memory_space<vmem>>, vector<32x128xf32>
    %cst_73 = arith.constant dense<0.000000e+00> : vector<16x128xf32>
    %275 = tpu.matmul %273, %274, %cst_73 {dimension_numbers = #tpu.dot_dimension_numbers<[1], [0], [0], [1], [0, 0, 1, 1], [], []>} : vector<16x32xf32>, vector<32x128xf32>, vector<16x128xf32> -> vector<16x128xf32>
    %c0_74 = arith.constant 0 : index
    %c0_75 = arith.constant 0 : index
    %276 = vector.load %arg9[%c0_74, %c0_75] : memref<16x128xf32, #tpu.memory_space<vmem>>, vector<16x128xf32>
    tpu.vector_store %arg9[%c0_74, %c0_75], %275 {strides = array<i32>} : memref<16x128xf32, #tpu.memory_space<vmem>>, vector<16x128xf32>,
    return
  }
  func.func @transform_0(%arg0: i32) -> (i32, i32) {
    %c0_i32 = arith.constant 0 : i32
    %c0_i32_0 = arith.constant 0 : i32
    %c0_i32_1 = arith.constant 0 : i32
    return %c0_i32, %c0_i32_0 : i32, i32
  }
  func.func @transform_1(%arg0: i32) -> (i32, i32) {
    %c0_i32 = arith.constant 0 : i32
    %c0_i32_0 = arith.constant 0 : i32
    %c0_i32_1 = arith.constant 0 : i32
    return %c0_i32, %c0_i32_0 : i32, i32
  }
  func.func @transform_2(%arg0: i32) -> (i32, i32) {
    %c0_i32 = arith.constant 0 : i32
    %c0_i32_0 = arith.constant 0 : i32
    %c0_i32_1 = arith.constant 0 : i32
    return %c0_i32, %c0_i32_0 : i32, i32
  }
  func.func @transform_3(%arg0: i32) -> (i32, i32, i32) {
    %c0_i32 = arith.constant 0 : i32
    %c0_i32_0 = arith.constant 0 : i32
    %c0_i32_1 = arith.constant 0 : i32
    %c0_i32_2 = arith.constant 0 : i32
    return %c0_i32, %c0_i32_0, %c0_i32_1 : i32, i32, i32
  }
  func.func @transform_4(%arg0: i32) -> (i32, i32, i32) {
    %c0_i32 = arith.constant 0 : i32
    %c0_i32_0 = arith.constant 0 : i32
    %c0_i32_1 = arith.constant 0 : i32
    %c0_i32_2 = arith.constant 0 : i32
    return %c0_i32, %c0_i32_0, %c0_i32_1 : i32, i32, i32
  }
  func.func @transform_5(%arg0: i32) -> (i32, i32) {
    %c0_i32 = arith.constant 0 : i32
    %c0_i32_0 = arith.constant 0 : i32
    %c0_i32_1 = arith.constant 0 : i32
    return %c0_i32, %c0_i32_0 : i32, i32
  }
  func.func @transform_6(%arg0: i32) -> (i32, i32) {
    %c0_i32 = arith.constant 0 : i32
    %c0_i32_0 = arith.constant 0 : i32
    %c0_i32_1 = arith.constant 0 : i32
    return %c0_i32, %c0_i32_0 : i32, i32
  }
  func.func @transform_7(%arg0: i32) -> (i32, i32) {
    %c0_i32 = arith.constant 0 : i32
    %c0_i32_0 = arith.constant 0 : i32
    %c0_i32_1 = arith.constant 0 : i32
    return %c0_i32, %c0_i32_0 : i32, i32
  }
  func.func @transform_8(%arg0: i32) -> (i32, i32) {
    %c0_i32 = arith.constant 0 : i32
    %c0_i32_0 = arith.constant 0 : i32
    %c0_i32_1 = arith.constant 0 : i32
    return %c0_i32, %c0_i32_0 : i32, i32
  }
}

</mosaic_0001>

<bundles_post_ra>
// kernel: _forward_impl.1
= control target key start
LH: loop header
LB: loop body
LE: loop exit
PB: predicated region body
PF: predicated region fallthrough
CT: control target
= control target key end

     0   :  { %v1546_v0 = vmov 0   ;;  %v120_v14 = vlaneseq  ;;  %vm134_vm0 = vcmask 523264   ;;  %v1547_v17 = vmov 0.0   ;;  %s1549_s24 = smov 96   ;;  %s1550_s9 = smov 16   ;;  %s2339_s0 = inlined_call_operand.vmem [shape: s32[16,1], index: 0, kind: input, shape index: {}]   ;;  %s2340_s2 = inlined_call_operand.vmem [shape: f32[144,32], index: 2, kind: input, shape index: {}]   ;;  %s2341_s5 = inlined_call_operand.vmem [shape: f32[8,128], index: 5, kind: input, shape index: {}]   ;;  %s2342_s3 = inlined_call_operand.vmem [shape: f32[2,32,256], index: 3, kind: input, shape index: {}]   ;;  %s2343_s6 = inlined_call_operand.vmem [shape: f32[176,64], index: 6, kind: input, shape index: {}]   ;;  %s2344_s1 = inlined_call_operand.vmem [shape: f32[1,16], index: 1, kind: input, shape index: {}]   ;;  %s2345_s4 = inlined_call_operand.vmem [shape: f32[2,128,32], index: 4, kind: input, shape index: {}]   ;;  %s2346_s7 = inlined_call_operand.vmem [shape: f32[32,128], index: 7, kind: input, shape index: {}]   ;;  %s2347_s8 = inlined_call_operand.vmem [shape: f32[16,128], index: 8, kind: output, shape index: {}]  }
   0x1   :  { %1438 = vset.pattern.permute.xlu0 %v1546_v0  ;;  %v118_v1 = vld [vmem:[%s2339_s0] sm:$0xff]  ;;  %v36_v2 = vld [vmem:[%s2340_s2 + $0x38] sm:$0xff]  ;;  %v35_v3 = vld [vmem:[%s2340_s2 + $0x30] sm:$0xff]  ;;  %vm165_vm3 = vcmask 261120   ;;  %v1548_v44 = vmov 32.0   ;;  %s1551_s12 = smov 64  }
   0x2   :  { %123 = vperm.xlu0 %1438, %v118_v1   ;;  %149 = vmatpush.msra.mxu0 %v36_v2  ;;  %v34_v4 = vld [vmem:[%s2340_s2 + $0x28] sm:$0xff]  ;;  %v33_v5 = vld [vmem:[%s2340_s2 + $0x20] sm:$0xff]  ;;  %v32_v7 = vld [vmem:[%s2340_s2 + $0x18] sm:$0xff]  ;;  %v121_v15 = vand.u32 127, %v120_v14  ;;  %1499 = vrcp.f32 %v1548_v44  ;;  %s1552_s13 = smov 48   ;;  %s1553_s14 = smov 32  }
   0x3   :  { %v119_v6 = vld [vmem:[%s2339_s0 + $0x8] sm:$0xff]  ;;  %v31_v8 = vld [vmem:[%s2340_s2 + $0x10] sm:$0xff]  ;;  %v29_v10 = vld [vmem:[%s2340_s2] sm:$0xff]  ;;  %vm254_vm11 = vcmask 130048   ;;  %vm259_vm12 = vcmask 392192  }
   0x4   :  { %150 = vmatpush.msra.mxu0 %v35_v3  ;;  %v30_v9 = vld [vmem:[%s2340_s2 + $0x8] sm:$0xff]  ;;  %v40_v11 = vld [vmem:[%s2340_s2 + $0x58] sm:$0xff]  ;;  %v39_v12 = vld [vmem:[%s2340_s2 + $0x50] sm:$0xff] }
   0x5   :  { %184 = vmatpush.msra.mxu1 %v40_v11  ;;  %v38_v13 = vld [vmem:[%s2340_s2 + $0x48] sm:$0xff]  ;;  %v37_v21 = vld [vmem:[%s2340_s2 + $0x40] sm:$0xff]  ;;  %v44_v22 = vld [vmem:[%s2340_s2 + $0x78] sm:$0xff] }
   0x6   :  { %151 = vmatpush.msra.mxu0 %v34_v4  ;;  %v43_v25 = vld [vmem:[%s2340_s2 + $0x70] sm:$0xff]  ;;  %v42_v26 = vld [vmem:[%s2340_s2 + $0x68] sm:$0xff]  ;;  %v41_v27 = vld [vmem:[%s2340_s2 + $0x60] sm:$0xff] }
   0x7   :  { %185 = vmatpush.msra.mxu1 %v39_v12  ;;  %v1660_v28 = vld [vmem:[%s2341_s5] sm:$0xff]  ;;  %v46_v40 = vld [vmem:[%s2340_s2 + $0x88] sm:$0xff]  ;;  %v1699_v62 = vld [vmem:[%s2342_s3 + $0x30] sm:$0xff] }
   0x8   :  { %152 = vmatpush.msra.mxu0 %v33_v5  ;;  %v1663_v29 = vperm.slane %v1660_v28, 0  ;;  %v45_v36 = vld [vmem:[%s2340_s2 + $0x80] sm:$0xff]  ;;  %v1500_v45 = vpop.eup %1499  ;;  %v1684_v47 = vperm.slane %v1660_v28, 1  ;;  %341 = vmatpush.msra.mxu3 %v1699_v62  ;;  %v1711_v0 = vld [vmem:[%s2342_s3 + $0x10] sm:$0xff] }
   0x9   :  { %186 = vmatpush.msra.mxu1 %v38_v13  ;;  %v269_v46 = vmul.f32 32.0, %v1500_v45  ;;  %vm273_vm4 = vweird.f32 %v1500_v45  ;;  %v1705_v63 = vld [vmem:[%s2342_s3 + $0x20] sm:$0xff] }
   0xa   :  { %126 = vperm.xlu0 %1438, %v119_v6   ;;  %153 = vmatpush.msra.mxu0 %v32_v7  ;;  %v1717_v1 = vld [vmem:[%s2342_s3] sm:$0xff]  ;;  %v1459_v2 = vpack.i.bf16 %v1705_v63, %v1699_v62 }
   0xb   :  { %187 = vmatpush.msra.mxu1 %v37_v21  ;;  %v270_v48 = vsub.f32 1.0, %v269_v46  ;;  %342 = vmatpush.msra.mxu3 %v1705_v63  ;;  %v1464_v6 = vpack.i.bf16 %v1717_v1, %v1711_v0 }
   0xc   :  { %154 = vmatpush.msra.mxu0 %v31_v8 }
   0xd   :  { %v271_v49 = vmul.f32 %v1500_v45, %v270_v48  ;;  %343 = vmatpush.msra.mxu3 %v1711_v0 }
   0xe   :  { %155 = vmatpush.msra.mxu0 %v30_v9 }
   0xf   :  { %v272_v50 = vadd.f32 %v1500_v45, %v271_v49  ;;  %344 = vmatpush.msra.mxu3 %v1717_v1 }
  0x10   :  { %156 = vmatpush.msra.mxu0 %v29_v10 }
  0x11   :  { %v1688_v51 = vsel %vm273_vm4, %v1500_v45, %v272_v50  ;;  %v226_v50 = vld [vmem:[%s2344_s1] sm:$0x1] }
  0x12   :  { %215 = vmatpush.msrb.mxu0 %v44_v22  ;;  %317 = vrot.lane.b32.xlu0 %v1684_v47, %s1549_s24 }
  0x14   :  { %216 = vmatpush.msrb.mxu0 %v43_v25 }
  0x16   :  { %217 = vmatpush.msrb.mxu0 %v42_v26 }
  0x18   :  { %218 = vmatpush.msrb.mxu0 %v41_v27 }
  0x74   :  { %v124_v16 = vpop.permute.xlu0 %123 }
  0x75   :  { %vm128_vm1 = vcmp.eq.s32.totalorder %v124_v16, %v121_v15 }
  0x76   :  { %v1396_v18 = vsel %vm128_vm1, 1.0, %v1547_v17 }
  0x77   :  { %1398 = vmatmul.msk.f32.vlgmr.msra.gmra.mxu0 %vm134_vm0, %v1396_v18 }
  0x7c   :  { %v127_v19 = vpop.permute.xlu0 %126 }
  0x7d   :  { %vm129_vm2 = vcmp.eq.s32.totalorder %v127_v19, %v121_v15 }
  0x7e   :  { %v1397_v20 = vsel %vm129_vm2, 1.0, %v1547_v17 }
  0x7f   :  { %1399 = vmatmul.msk.f32.gmra.mxu0 %vm134_vm0, %v1397_v20 }
  0x84   :  { %v318_v22 = vpop.permute.xlu0 %317 }
  0xf4   :  { %v158_v23 = vpop.f32.mrf.mxu0 }
  0xf5   :  { %1400 = vmatmul.msk.f32.vlgmr.msra.gmra.mxu1 %vm165_vm3, %v158_v23 }
  0xfc   :  { %v161_v24 = vpop.f32.mrf.mxu0 }
  0xfd   :  { %1401 = vmatmul.msk.f32.gmra.mxu1 %vm165_vm3, %v161_v24 }
 0x172   :  { %v189_v30 = vpop.f32.mrf.mxu1 }
 0x173   :  { %v190_v31 = vadd.f32 %v189_v30, %v1663_v29 }
 0x175   :  { %v195_v32 = vmax.f32 %v190_v31, 0.0 }
 0x177   :  { %1402 = vmatmul.msk.f32.vlgmr.msrb.gmra.mxu0 %vm165_vm3, %v195_v32 }
 0x17a   :  { %v192_v33 = vpop.f32.mrf.mxu1 }
 0x17b   :  { %v193_v34 = vadd.f32 %v192_v33, %v1663_v29  ;;  %v1731_v33 = vperm.slane %v1660_v28, 3 }
 0x17d   :  { %v196_v35 = vmax.f32 %v193_v34, 0.0 }
 0x17f   :  { %1403 = vmatmul.msk.f32.gmra.mxu0 %vm165_vm3, %v196_v35 }
 0x1f4   :  { %v220_v37 = vpop.f32.mrf.mxu0 }
 0x1f5   :  { %v1672_v38 = vadd.f32 %v220_v37, %v45_v36 }
 0x1f7   :  { %v262_v39 = vsel %vm165_vm3, %v1672_v38, 0.0 }
 0x1f8   :  { %263 = vadd.xlane.f32.xlu1 %v262_v39 }
 0x1fc   :  { %v223_v41 = vpop.f32.mrf.mxu0 }
 0x1fd   :  { %v1679_v42 = vadd.f32 %v223_v41, %v46_v40 }
 0x1ff   :  { %v265_v43 = vsel %vm165_vm3, %v1679_v42, 0.0 }
 0x200   :  { %266 = vadd.xlane.f32.xlu1 %v265_v43  ;;  %v60_v43 = vld [vmem:[%s2343_s6 + $0x60] sm:$0xff] }
 0x26b   :  { %v264_v52 = vpop.xlane.xlu1 %263 }
 0x26c   :  { %v275_v53 = vmul.f32 %v1688_v51, %v264_v52  ;;  %v227_v52 = vsub.f32 1.0, %v226_v50 }
 0x26e   :  { %v277_v54 = vsub.f32 %v1672_v38, %v275_v53  ;;  %v228_v53 = vmul.f32 -1e+09, %v227_v52 }
 0x270   :  { %v279_v55 = vmul.f32 %v277_v54, %v277_v54 }
 0x272   :  { %v281_v56 = vsel %vm165_vm3, %v279_v55, 0.0  ;;  %v68_v55 = vld [vmem:[%s2343_s6 + $0xa0] sm:$0xff] }
 0x273   :  { %282 = vadd.xlane.f32.xlu2 %v281_v56  ;;  %v267_v57 = vpop.xlane.xlu1 %266 }
 0x274   :  { %v276_v58 = vmul.f32 %v1688_v51, %v267_v57 }
 0x276   :  { %v278_v59 = vsub.f32 %v1679_v42, %v276_v58 }
 0x278   :  { %v280_v60 = vmul.f32 %v278_v59, %v278_v59 }
 0x27a   :  { %v284_v61 = vsel %vm165_vm3, %v280_v60, 0.0 }
 0x27b   :  { %285 = vadd.xlane.f32.xlu2 %v284_v61  ;;  %v69_v61 = vld [vmem:[%s2343_s6 + $0xa8] sm:$0xff] }
 0x2e6   :  { %v283_v3 = vpop.xlane.xlu2 %282 }
 0x2e7   :  { %v287_v4 = vmul.f32 %v283_v3, %v1688_v51 }
 0x2e9   :  { %v289_v5 = vadd.f32 1e-05, %v287_v4 }
 0x2eb   :  { %1501 = vrsqrt.f32 %v289_v5  ;;  %vm297_vm6 = vweird.f32 %v289_v5 }
 0x2ee   :  { %v286_v7 = vpop.xlane.xlu2 %285 }
 0x2ef   :  { %v288_v8 = vmul.f32 %v286_v7, %v1688_v51 }
 0x2f1   :  { %v1502_v9 = vpop.eup %1501  ;;  %v290_v10 = vadd.f32 1e-05, %v288_v8 }
 0x2f2   :  { %v292_v11 = vmul.f32 %v1502_v9, %v289_v5  ;;  %vm298_vm5 = vweird.f32 %v1502_v9 }
 0x2f3   :  { %1503 = vrsqrt.f32 %v290_v10  ;;  %vm299_vm7 = vmor %vm297_vm6, %vm298_vm5  ;;  %vm307_vm9 = vweird.f32 %v290_v10 }
 0x2f4   :  { %v293_v12 = vmul.f32 %v1502_v9, %v292_v11 }
 0x2f6   :  { %v294_v13 = vmul.f32 0.5, %v293_v12 }
 0x2f8   :  { %v295_v14 = vsub.f32 1.5, %v294_v13 }
 0x2f9   :  { %v1504_v15 = vpop.eup %1503 }
 0x2fa   :  { %v296_v16 = vmul.f32 %v1502_v9, %v295_v14  ;;  %v302_v17 = vmul.f32 %v1504_v15, %v290_v10  ;;  %vm308_vm8 = vweird.f32 %v1504_v15  ;;  %v1784_v10 = vld [vmem:[%s2343_s6 + $0x58] sm:$0xff] }
 0x2fb   :  { %vm309_vm10 = vmor %vm307_vm9, %vm308_vm8 }
 0x2fc   :  { %v303_v18 = vmul.f32 %v1504_v15, %v302_v17  ;;  %v300_v19 = vsel %vm299_vm7, %v1502_v9, %v296_v16  ;;  %v1794_v17 = vld [vmem:[%s2343_s6 + $0x50] sm:$0xff] }
 0x2fd   :  { %v311_v20 = vmul.f32 %v300_v19, %v277_v54  ;;  %v230_v54 = vperm.slane %v228_v53, 0  ;;  %v1801_v19 = vld [vmem:[%s2343_s6 + $0x48] sm:$0xff] }
 0x2fe   :  { %v304_v21 = vmul.f32 0.5, %v303_v18 }
 0x2ff   :  { %v314_v23 = vmul.f32 %v1684_v47, %v311_v20  ;;  %v232_v58 = vadd.f32 %v230_v54, %v68_v55  ;;  %v233_v3 = vadd.f32 %v230_v54, %v69_v61  ;;  %v66_v61 = vld [vmem:[%s2343_s6 + $0x90] sm:$0xff] }
 0x300   :  { %v305_v24 = vsub.f32 1.5, %v304_v21 }
 0x301   :  { %v320_v25 = vadd.f32 %v318_v22, %v314_v23 }
 0x302   :  { %v306_v26 = vmul.f32 %v1504_v15, %v305_v24 }
 0x303   :  { %1404 = vmatmul.msk.f32.vlgmr.msra.gmra.mxu3 %vm165_vm3, %v320_v25 }
 0x304   :  { %v310_v27 = vsel %vm309_vm10, %v1504_v15, %v306_v26  ;;  %v1811_v26 = vld [vmem:[%s2343_s6 + $0x40] sm:$0xff] }
 0x305   :  { %v312_v30 = vmul.f32 %v310_v27, %v278_v59 }
 0x307   :  { %v315_v31 = vmul.f32 %v1684_v47, %v312_v30 }
 0x309   :  { %v321_v32 = vadd.f32 %v318_v22, %v315_v31 }
 0x30b   :  { %1405 = vmatmul.msk.f32.gmra.mxu3 %vm165_vm3, %v321_v32 }
 0x386   :  { %v346_v34 = vpop.f32.mrf.mxu3 }
 0x387   :  { %v1734_v35 = vadd.f32 %v346_v34, %v1731_v33 }
 0x389   :  { %354 = vrot.lane.b32.xlu1 %v1734_v35, %s1549_s24 }
 0x38e   :  { %v349_v36 = vpop.f32.mrf.mxu3 }
 0x38f   :  { %v1739_v37 = vadd.f32 %v349_v36, %v1731_v33 }
 0x391   :  { %356 = vrot.lane.b32.xlu2 %v1739_v37, %s1549_s24 }
 0x3eb   :  { %v357_v40 = vpop.permute.xlu2 %356 }
 0x3fb   :  { %v355_v39 = vpop.permute.xlu1 %354 }
 0x3fc   :  { %360 = vxpose.xlu0.b32.start [1/2] (short) (narrow) %v355_v39, 32 }
 0x404   :  { %361 = vxpose.xlu0.b32.end [2/2] (short) (narrow) %v357_v40, 32 }
 0x4a0   :  { %v1743_v41 = vpop.trf.xlu0 }
 0x4a1   :  { %396 = vrot.lane.b32.xlu0 %v1743_v41, %s1550_s9 }
 0x4a8   :  { %v377_v44 = vpop.trf.xlu0 }
 0x4a9   :  { %528 = vrot.lane.b32.xlu0 %v60_v43, %s1551_s12  ;;  %422 = vrot.lane.b32.xlu2 %v377_v44, %s1552_s13 }
 0x4aa   :  { %398 = vrot.lane.b32.xlu1 %v377_v44, %s1550_s9 }
 0x4b0   :  { %v378_v45 = vpop.trf.xlu0 }
 0x4b1   :  { %400 = vrot.lane.b32.xlu2 %v378_v45, %s1550_s9 }
 0x4b2   :  { %410 = vrot.lane.b32.xlu1 %v377_v44, %s1553_s14 }
 0x4b8   :  { %v379_v46 = vpop.trf.xlu0 }
 0x4b9   :  { %412 = vrot.lane.b32.xlu2 %v378_v45, %s1553_s14 }
 0x4ba   :  { %414 = vrot.lane.b32.xlu1 %v379_v46, %s1553_s14 }
 0x4c1   :  { %424 = vrot.lane.b32.xlu2 %v378_v45, %s1552_s13 }
 0x4c2   :  { %426 = vrot.lane.b32.xlu1 %v379_v46, %s1552_s13 }
 0x4c9   :  { %402 = vrot.lane.b32.xlu2 %v379_v46, %s1550_s9 }
 0x4ca   :  { %408 = vrot.lane.b32.xlu1 %v1743_v41, %s1553_s14 }
 0x4d1   :  { %420 = vrot.lane.b32.xlu2 %v1743_v41, %s1552_s13 }
 0x4d2   :  { %236 = vrot.lane.b32.xlu1 %v232_v58, %s1550_s9 }
 0x4d9   :  { %242 = vrot.lane.b32.xlu2 %v232_v58, %s1553_s14 }
 0x4da   :  { %248 = vrot.lane.b32.xlu1 %v232_v58, %s1552_s13 }
 0x4e1   :  { %238 = vrot.lane.b32.xlu2 %v233_v3, %s1550_s9 }
 0x4e2   :  { %244 = vrot.lane.b32.xlu1 %v233_v3, %s1553_s14 }
 0x4e9   :  { %250 = vrot.lane.b32.xlu2 %v233_v3, %s1552_s13 }
 0x503   :  { %v423_v48 = vpop.permute.xlu2 %422 }
 0x50b   :  { %v401_v49 = vpop.permute.xlu2 %400 }
 0x50c   :  { %v434_v7 = vsel %vm254_vm11, %v378_v45, %v401_v49 }
 0x513   :  { %v413_v56 = vpop.permute.xlu2 %412  ;;  %v397_v22 = vpop.permute.xlu0 %396 }
 0x514   :  { %v438_v11 = vsel %vm165_vm3, %v434_v7, %v413_v56  ;;  %v432_v24 = vsel %vm254_vm11, %v1743_v41, %v397_v22  ;;  %v62_v7 = vld [vmem:[%s2343_s6 + $0x70] sm:$0xff] }
 0x51b   :  { %v425_v60 = vpop.permute.xlu2 %424 }
 0x51c   :  { %v399_v57 = vpop.permute.xlu1 %398  ;;  %v442_v15 = vsel %vm259_vm12, %v438_v11, %v425_v60  ;;  %v67_v60 = vld [vmem:[%s2343_s6 + $0x98] sm:$0xff]  ;;  %v1883_v11 = vld [vmem:[%s2343_s6 + $0x20] sm:$0xff] }
 0x51d   :  { %v433_v8 = vsel %vm254_vm11, %v377_v44, %v399_v57  ;;  %v446_v21 = vmul.f32 %v442_v15, %v1794_v17  ;;  %v1907_v15 = vld [vmem:[%s2343_s6] sm:$0xff] }
 0x523   :  { %v403_v5 = vpop.permute.xlu2 %402 }
 0x524   :  { %v411_v59 = vpop.permute.xlu1 %410  ;;  %v435_v9 = vsel %vm254_vm11, %v379_v46, %v403_v5  ;;  %v63_v5 = vld [vmem:[%s2343_s6 + $0x78] sm:$0xff] }
 0x525   :  { %v437_v12 = vsel %vm165_vm3, %v433_v8, %v411_v59  ;;  %v1842_v59 = vld [vmem:[%s2343_s6 + $0x30] sm:$0xff]  ;;  %v61_v8 = vld [vmem:[%s2343_s6 + $0x68] sm:$0xff] }
 0x526   :  { %v441_v20 = vsel %vm259_vm12, %v437_v12, %v423_v48  ;;  %v1889_v12 = vld [vmem:[%s2343_s6 + $0x18] sm:$0xff] }
 0x527   :  { %v445_v23 = vmul.f32 %v441_v20, %v1801_v19 }
 0x52b   :  { %v421_v27 = vpop.permute.xlu2 %420 }
 0x52c   :  { %v415_v4 = vpop.permute.xlu1 %414 }
 0x52d   :  { %v439_v13 = vsel %vm165_vm3, %v435_v9, %v415_v4  ;;  %v64_v4 = vld [vmem:[%s2343_s6 + $0x80] sm:$0xff]  ;;  %v1877_v9 = vld [vmem:[%s2343_s6 + $0x28] sm:$0xff] }
 0x533   :  { %v243_v36 = vpop.permute.xlu2 %242 }
 0x534   :  { %v427_v14 = vpop.permute.xlu1 %426 }
 0x535   :  { %v443_v16 = vsel %vm259_vm12, %v439_v13, %v427_v14  ;;  %v1895_v13 = vld [vmem:[%s2343_s6 + $0x10] sm:$0xff]  ;;  %v1901_v14 = vld [vmem:[%s2343_s6 + $0x8] sm:$0xff] }
 0x536   :  { %v447_v18 = vmul.f32 %v443_v16, %v1784_v10 }
 0x538   :  { %464 = vmatpush.msrb.mxu1 %v447_v18 }
 0x53a   :  { %465 = vmatpush.msrb.mxu1 %v446_v21 }
 0x53b   :  { %v239_v40 = vpop.permute.xlu2 %238 }
 0x53c   :  { %v409_v25 = vpop.permute.xlu1 %408  ;;  %466 = vmatpush.msrb.mxu1 %v445_v23  ;;  %v256_v44 = vsel %vm254_vm11, %v233_v3, %v239_v40  ;;  %v65_v3 = vld [vmem:[%s2343_s6 + $0x88] sm:$0xff] }
 0x53d   :  { %v436_v30 = vsel %vm165_vm3, %v432_v24, %v409_v25 }
 0x53e   :  { %v440_v31 = vsel %vm259_vm12, %v436_v30, %v421_v27 }
 0x53f   :  { %v444_v32 = vmul.f32 %v440_v31, %v1811_v26 }
 0x541   :  { %467 = vmatpush.msrb.mxu1 %v444_v32 }
 0x542   :  { %1406 = vmatmul.msk.f32.vlgmr.msrb.gmra.mxu1 %vm165_vm3, %v1734_v35 }
 0x543   :  { %v251_v53 = vpop.permute.xlu2 %250 }
 0x544   :  { %v237_v34 = vpop.permute.xlu1 %236 }
 0x545   :  { %v255_v41 = vsel %vm254_vm11, %v232_v58, %v237_v34  ;;  %v1837_v58 = vld [vmem:[%s2343_s6 + $0x38] sm:$0xff] }
 0x546   :  { %v257_v43 = vsel %vm165_vm3, %v255_v41, %v243_v36  ;;  %501 = vmatpush.msra.mxu2 %v1837_v58 }
 0x548   :  { %502 = vmatpush.msra.mxu2 %v1842_v59 }
 0x54a   :  { %1407 = vmatmul.msk.f32.gmra.mxu1 %vm165_vm3, %v1739_v37  ;;  %503 = vmatpush.msra.mxu2 %v1877_v9 }
 0x54c   :  { %v249_v39 = vpop.permute.xlu1 %248  ;;  %504 = vmatpush.msra.mxu2 %v1883_v11 }
 0x54d   :  { %v1824_v45 = vsel %vm259_vm12, %v257_v43, %v249_v39 }
 0x54e   :  { %505 = vmatpush.msra.mxu2 %v1889_v12 }
 0x550   :  { %506 = vmatpush.msra.mxu2 %v1895_v13 }
 0x552   :  { %507 = vmatpush.msra.mxu2 %v1901_v14 }
 0x554   :  { %v245_v48 = vpop.permute.xlu1 %244  ;;  %508 = vmatpush.msra.mxu2 %v1907_v15 }
 0x555   :  { %v258_v52 = vsel %vm165_vm3, %v256_v44, %v245_v48 }
 0x556   :  { %v1830_v54 = vsel %vm259_vm12, %v258_v52, %v251_v53  ;;  %v1949_v52 = vpop.permute.xlu0 %528 }
 0x5bf   :  { %v469_v46 = vpop.f32.mrf.mxu1 }
 0x5c0   :  { %v470_v49 = vadd.f32 %v469_v46, %v1824_v45 }
 0x5c2   :  { %v475_v50 = vsel %vm134_vm0, %v470_v49, -inf }
 0x5c3   :  { %476 = vmax.xlane.f32.xlu1 %v475_v50 }
 0x5c7   :  { %v472_v55 = vpop.f32.mrf.mxu1 }
 0x5c8   :  { %v473_v56 = vadd.f32 %v472_v55, %v1830_v54  ;;  %v552_v55 = vmul.f32 %v1949_v52, %v1734_v35 }
 0x5ca   :  { %v478_v57 = vsel %vm134_vm0, %v473_v56, -inf }
 0x5cb   :  { %479 = vmax.xlane.f32.xlu2 %v478_v57 }
 0x5dc   :  { %542 = vrot.lane.b32.xlu1 %v67_v60, %s1551_s12 }
 0x5e3   :  { %540 = vrot.lane.b32.xlu2 %v66_v61, %s1551_s12 }
 0x5e4   :  { %538 = vrot.lane.b32.xlu1 %v65_v3, %s1551_s12 }
 0x5eb   :  { %536 = vrot.lane.b32.xlu2 %v64_v4, %s1551_s12 }
 0x5ec   :  { %534 = vrot.lane.b32.xlu1 %v63_v5, %s1551_s12 }
 0x5f3   :  { %532 = vrot.lane.b32.xlu2 %v62_v7, %s1551_s12 }
 0x5f4   :  { %530 = vrot.lane.b32.xlu1 %v61_v8, %s1551_s12 }
 0x636   :  { %v477_v16 = vpop.xlane.xlu1 %476 }
 0x637   :  { %v481_v18 = vsub.f32 %v470_v49, %v477_v16 }
 0x639   :  { %v483_v20 = vmul.f32 1.442695, %v481_v18 }
 0x63b   :  { %1505 = vpow2.f32 %v483_v20 }
 0x63e   :  { %v480_v21 = vpop.xlane.xlu2 %479 }
 0x63f   :  { %v482_v22 = vsub.f32 %v473_v56, %v480_v21 }
 0x641   :  { %v1910_v23 = vpop.eup %1505  ;;  %v485_v24 = vmul.f32 1.442695, %v482_v22 }
 0x642   :  { %1408 = vmatmul.msk.f32.vlgmr.msra.gmra.mxu2 %vm134_vm0, %v1910_v23 }
 0x643   :  { %1507 = vpow2.f32 %v485_v24 }
 0x646   :  { %v1914_v25 = vpop.permute.xlu2 %540 }
 0x647   :  { %v558_v31 = vmul.f32 %v1914_v25, %v1734_v35 }
 0x649   :  { %v1916_v27 = vpop.eup %1507 }
 0x64a   :  { %1409 = vmatmul.msk.f32.gmra.mxu2 %vm134_vm0, %v1916_v27 }
 0x64e   :  { %v1920_v30 = vpop.permute.xlu1 %542  ;;  %v1926_v36 = vpop.permute.xlu2 %536 }
 0x64f   :  { %v559_v32 = vmul.f32 %v1920_v30, %v1739_v37  ;;  %v556_v40 = vmul.f32 %v1926_v36, %v1734_v35 }
 0x651   :  { %v1439_v34 = vpack.i.bf16 %v558_v31, %v559_v32 }
 0x653   :  { %1440 = vrot.lane.b32.xlu2 %v1439_v34, %s1551_s12 }
 0x656   :  { %v1929_v39 = vpop.permute.xlu1 %538  ;;  %v1936_v44 = vpop.permute.xlu2 %532 }
 0x657   :  { %v557_v41 = vmul.f32 %v1929_v39, %v1739_v37  ;;  %v554_v48 = vmul.f32 %v1936_v44, %v1734_v35 }
 0x659   :  { %v1444_v43 = vpack.i.bf16 %v556_v40, %v557_v41 }
 0x65b   :  { %1445 = vrot.lane.b32.xlu1 %v1444_v43, %s1551_s12 }
 0x65e   :  { %v1938_v46 = vpop.permute.xlu1 %534 }
 0x65f   :  { %v555_v49 = vmul.f32 %v1938_v46, %v1739_v37 }
 0x661   :  { %v1449_v50 = vpack.i.bf16 %v554_v48, %v555_v49 }
 0x663   :  { %1450 = vrot.lane.b32.xlu0 %v1449_v50, %s1551_s12  ;;  %1460 = vrot.lane.b32.xlu1 %v1459_v2, %s1553_s14 }
 0x666   :  { %v1951_v53 = vpop.permute.xlu1 %530 }
 0x667   :  { %v553_v56 = vmul.f32 %v1951_v53, %v1739_v37 }
 0x669   :  { %v1454_v57 = vpack.i.bf16 %v552_v55, %v553_v56 }
 0x66b   :  { %1455 = vrot.lane.b32.xlu2 %v1454_v57, %s1551_s12  ;;  %1465 = vrot.lane.b32.xlu0 %v1464_v6, %s1553_s14 }
 0x673   :  { %638 = vrot.lane.b32.xlu2 %v1731_v33, %s1553_s14 }
 0x6ad   :  { %v1441_v62 = vpop.permute.xlu2 %1440 }
 0x6ae   :  { %v1442_v63 = vunpack.i.l.bf16 %v1441_v62  ;;  %v1443_v2 = vunpack.i.h.bf16 %v1441_v62 }
 0x6b0   :  { %606 = vmatpush.msrb.mxu3 %v1442_v63 }
 0x6b2   :  { %607 = vmatpush.msrb.mxu3 %v1443_v2 }
 0x6c5   :  { %v510_v35 = vpop.f32.mrf.mxu2  ;;  %v1456_v33 = vpop.permute.xlu2 %1455 }
 0x6c6   :  { %v511_v37 = vadd.f32 1e-20, %v510_v35  ;;  %v1457_v20 = vunpack.i.l.bf16 %v1456_v33  ;;  %v1458_v21 = vunpack.i.h.bf16 %v1456_v33 }
 0x6c8   :  { %1509 = vrcp.f32 %v511_v37 }
 0x6cd   :  { %v1446_v60 = vpop.permute.xlu1 %1445  ;;  %v513_v4 = vpop.f32.mrf.mxu2 }
 0x6ce   :  { %v1447_v61 = vunpack.i.l.bf16 %v1446_v60  ;;  %v1448_v3 = vunpack.i.h.bf16 %v1446_v60  ;;  %v514_v8 = vadd.f32 1e-20, %v513_v4  ;;  %v1510_v18 = vpop.eup %1509 }
 0x6cf   :  { %v518_v22 = vmul.f32 %v1510_v18, %v1910_v23  ;;  %v639_v23 = vpop.permute.xlu2 %638 }
 0x6d0   :  { %608 = vmatpush.msrb.mxu3 %v1447_v61  ;;  %1511 = vrcp.f32 %v514_v8  ;;  %v101_v8 = vld [vmem:[%s2345_s4 + $0x78] sm:$0xff] }
 0x6d1   :  { %775 = vmatpush.msrb.mxu2 %v101_v8 }
 0x6d2   :  { %609 = vmatpush.msrb.mxu3 %v1448_v3 }
 0x6d5   :  { %v1451_v5 = vpop.permute.xlu0 %1450  ;;  %v1461_v0 = vpop.permute.xlu1 %1460 }
 0x6d6   :  { %v1452_v1 = vunpack.i.l.bf16 %v1451_v5  ;;  %v1463_v6 = vunpack.i.h.bf16 %v1461_v0  ;;  %v1462_v7 = vunpack.i.l.bf16 %v1461_v0  ;;  %v1453_v16 = vunpack.i.h.bf16 %v1451_v5  ;;  %v1512_v34 = vpop.eup %1511  ;;  %v77_v5 = vld [vmem:[%s2342_s3 + $0x38] sm:$0xff]  ;;  %v75_v0 = vld [vmem:[%s2342_s3 + $0x28] sm:$0xff] }
 0x6d7   :  { %v519_v40 = vmul.f32 %v1512_v34, %v1916_v27  ;;  %745 = vmatpush.msra.mxu1 %v77_v5  ;;  %v88_v5 = vld [vmem:[%s2345_s4 + $0x10] sm:$0xff] }
 0x6d8   :  { %610 = vmatpush.msrb.mxu3 %v1452_v1  ;;  %659 = vmatpush.msra.mxu0 %v1462_v7  ;;  %v73_v1 = vld [vmem:[%s2342_s3 + $0x18] sm:$0xff] }
 0x6d9   :  { %746 = vmatpush.msra.mxu1 %v75_v0  ;;  %v87_v0 = vld [vmem:[%s2345_s4 + $0x8] sm:$0xff] }
 0x6da   :  { %611 = vmatpush.msrb.mxu3 %v1453_v16  ;;  %660 = vmatpush.msra.mxu0 %v1463_v6  ;;  %v71_v6 = vld [vmem:[%s2342_s3 + $0x8] sm:$0xff]  ;;  %v100_v16 = vld [vmem:[%s2345_s4 + $0x70] sm:$0xff] }
 0x6db   :  { %747 = vmatpush.msra.mxu1 %v73_v1  ;;  %776 = vmatpush.msrb.mxu2 %v100_v16  ;;  %v86_v1 = vld [vmem:[%s2345_s4] sm:$0xff] }
 0x6dc   :  { %612 = vmatpush.msrb.mxu3 %v1457_v20 }
 0x6dd   :  { %v1466_v24 = vpop.permute.xlu0 %1465  ;;  %748 = vmatpush.msra.mxu1 %v71_v6  ;;  %v726_v6 = vperm.slane %v1660_v28, 5 }
 0x6de   :  { %613 = vmatpush.msrb.mxu3 %v1458_v21  ;;  %v1468_v31 = vunpack.i.h.bf16 %v1466_v24  ;;  %v1467_v32 = vunpack.i.l.bf16 %v1466_v24 }
 0x6df   :  { %1410 = vmatmul.msk.f32.vlgmr.msrb.gmra.mxu3 %vm134_vm0, %v518_v22  ;;  %1032 = vmatpush.msrb.mxu1 %v1837_v58  ;;  %v99_v58 = vld [vmem:[%s2345_s4 + $0x68] sm:$0xff] }
 0x6e0   :  { %661 = vmatpush.msra.mxu0 %v1467_v32  ;;  %777 = vmatpush.msrb.mxu2 %v99_v58 }
 0x6e1   :  { %1033 = vmatpush.msrb.mxu1 %v1842_v59 }
 0x6e2   :  { %662 = vmatpush.msra.mxu0 %v1468_v31 }
 0x6e3   :  { %1034 = vmatpush.msrb.mxu1 %v1877_v9 }
 0x6e5   :  { %1035 = vmatpush.msrb.mxu1 %v1883_v11 }
 0x6e7   :  { %1411 = vmatmul.msk.f32.gmra.mxu3 %vm134_vm0, %v519_v40  ;;  %1036 = vmatpush.msrb.mxu1 %v1889_v12 }
 0x6e9   :  { %1037 = vmatpush.msrb.mxu1 %v1895_v13 }
 0x6eb   :  { %1038 = vmatpush.msrb.mxu1 %v1901_v14 }
 0x6ed   :  { %1039 = vmatpush.msrb.mxu1 %v1907_v15 }
 0x762   :  { %v615_v41 = vpop.f32.mrf.mxu3 }
 0x763   :  { %1412 = vmatmul.msk.f32.vlgmr.msra.gmra.mxu0 %vm165_vm3, %v615_v41 }
 0x76a   :  { %v618_v43 = vpop.f32.mrf.mxu3 }
 0x76b   :  { %1413 = vmatmul.msk.f32.gmra.mxu0 %vm165_vm3, %v618_v43 }
 0x7e0   :  { %v664_v48 = vpop.f32.mrf.mxu0 }
 0x7e1   :  { %v665_v49 = vadd.f32 %v664_v48, %v639_v23 }
 0x7e3   :  { %v1971_v50 = vadd.f32 %v665_v49, %v1672_v38 }
 0x7e5   :  { %v672_v55 = vsel %vm165_vm3, %v1971_v50, 0.0 }
 0x7e6   :  { %673 = vadd.xlane.f32.xlu1 %v672_v55 }
 0x7e8   :  { %v667_v56 = vpop.f32.mrf.mxu0 }
 0x7e9   :  { %v668_v27 = vadd.f32 %v667_v56, %v639_v23 }
 0x7eb   :  { %v1976_v57 = vadd.f32 %v668_v27, %v1679_v42 }
 0x7ed   :  { %v675_v62 = vsel %vm165_vm3, %v1976_v57, 0.0 }
 0x7ee   :  { %676 = vadd.xlane.f32.xlu0 %v675_v62 }
 0x802   :  { %716 = vrot.lane.b32.xlu0 %v1684_v47, %s1551_s12 }
 0x859   :  { %v674_v63 = vpop.xlane.xlu1 %673 }
 0x85a   :  { %v678_v38 = vmul.f32 %v674_v63, %v1688_v51  ;;  %v98_v63 = vld [vmem:[%s2345_s4 + $0x60] sm:$0xff] }
 0x85b   :  { %778 = vmatpush.msrb.mxu2 %v98_v63  ;;  %v2084_v63 = vperm.slane %v1660_v28, 2 }
 0x85c   :  { %v680_v2 = vsub.f32 %v1971_v50, %v678_v38  ;;  %v97_v38 = vld [vmem:[%s2345_s4 + $0x58] sm:$0xff] }
 0x85d   :  { %779 = vmatpush.msrb.mxu2 %v97_v38 }
 0x85e   :  { %v682_v35 = vmul.f32 %v680_v2, %v680_v2 }
 0x860   :  { %v684_v60 = vsel %vm165_vm3, %v682_v35, 0.0  ;;  %v95_v35 = vld [vmem:[%s2345_s4 + $0x48] sm:$0xff] }
 0x861   :  { %685 = vadd.xlane.f32.xlu2 %v684_v60  ;;  %v677_v61 = vpop.xlane.xlu0 %676  ;;  %v94_v60 = vld [vmem:[%s2345_s4 + $0x40] sm:$0xff] }
 0x862   :  { %v679_v42 = vmul.f32 %v677_v61, %v1688_v51  ;;  %v93_v61 = vld [vmem:[%s2345_s4 + $0x38] sm:$0xff] }
 0x864   :  { %v1987_v37 = vsub.f32 %v1976_v57, %v679_v42  ;;  %v92_v42 = vld [vmem:[%s2345_s4 + $0x30] sm:$0xff] }
 0x866   :  { %v683_v3 = vmul.f32 %v1987_v37, %v1987_v37 }
 0x868   :  { %v687_v4 = vsel %vm165_vm3, %v683_v3, 0.0  ;;  %v90_v3 = vld [vmem:[%s2345_s4 + $0x20] sm:$0xff] }
 0x869   :  { %688 = vadd.xlane.f32.xlu1 %v687_v4  ;;  %v89_v4 = vld [vmem:[%s2345_s4 + $0x18] sm:$0xff] }
 0x874   :  { %v717_v40 = vpop.permute.xlu0 %716 }
 0x879   :  { %721 = vrot.lane.b32.xlu2 %v1684_v47, %s1553_s14 }
 0x881   :  { %848 = vrot.lane.b32.xlu2 %v2084_v63, %s1549_s24 }
 0x8d4   :  { %v686_v47 = vpop.xlane.xlu2 %685 }
 0x8d5   :  { %v690_v7 = vmul.f32 %v686_v47, %v1688_v51 }
 0x8d7   :  { %v692_v33 = vadd.f32 1e-05, %v690_v7 }
 0x8d9   :  { %1513 = vrsqrt.f32 %v692_v33  ;;  %vm700_vm14 = vweird.f32 %v692_v33 }
 0x8dc   :  { %v689_v59 = vpop.xlane.xlu1 %688  ;;  %v722_v43 = vpop.permute.xlu2 %721 }
 0x8dd   :  { %v691_v9 = vmul.f32 %v689_v59, %v1688_v51 }
 0x8df   :  { %v1514_v11 = vpop.eup %1513  ;;  %v693_v18 = vadd.f32 1e-05, %v691_v9 }
 0x8e0   :  { %v695_v20 = vmul.f32 %v1514_v11, %v692_v33  ;;  %vm701_vm13 = vweird.f32 %v1514_v11 }
 0x8e1   :  { %1515 = vrsqrt.f32 %v693_v18  ;;  %vm702_vm15 = vmor %vm700_vm14, %vm701_vm13  ;;  %vm710_vm2 = vweird.f32 %v693_v18 }
 0x8e2   :  { %v696_v12 = vmul.f32 %v1514_v11, %v695_v20 }
 0x8e4   :  { %v697_v21 = vmul.f32 0.5, %v696_v12 }
 0x8e6   :  { %v698_v22 = vsub.f32 1.5, %v697_v21 }
 0x8e7   :  { %v1516_v24 = vpop.eup %1515 }
 0x8e8   :  { %v705_v13 = vmul.f32 %v1516_v24, %v693_v18  ;;  %v699_v31 = vmul.f32 %v1514_v11, %v698_v22  ;;  %vm711_vm1 = vweird.f32 %v1516_v24 }
 0x8e9   :  { %vm712_vm4 = vmor %vm710_vm2, %vm711_vm1 }
 0x8ea   :  { %v706_v32 = vmul.f32 %v1516_v24, %v705_v13  ;;  %v703_v34 = vsel %vm702_vm15, %v1514_v11, %v699_v31 }
 0x8eb   :  { %v714_v14 = vmul.f32 %v703_v34, %v680_v2  ;;  %v96_v2 = vld [vmem:[%s2345_s4 + $0x50] sm:$0xff] }
 0x8ec   :  { %v707_v41 = vmul.f32 0.5, %v706_v32  ;;  %780 = vmatpush.msrb.mxu2 %v96_v2 }
 0x8ed   :  { %v719_v23 = vmul.f32 %v717_v40, %v714_v14 }
 0x8ee   :  { %v708_v48 = vsub.f32 1.5, %v707_v41  ;;  %781 = vmatpush.msrb.mxu2 %v95_v35 }
 0x8ef   :  { %v724_v15 = vadd.f32 %v722_v43, %v719_v23 }
 0x8f0   :  { %v709_v49 = vmul.f32 %v1516_v24, %v708_v48  ;;  %782 = vmatpush.msrb.mxu2 %v94_v60 }
 0x8f1   :  { %1414 = vmatmul.msk.f32.vlgmr.msra.gmra.mxu1 %vm165_vm3, %v724_v15 }
 0x8f2   :  { %v713_v55 = vsel %vm712_vm4, %v1516_v24, %v709_v49  ;;  %783 = vmatpush.msrb.mxu2 %v93_v61 }
 0x8f3   :  { %v715_v56 = vmul.f32 %v713_v55, %v1987_v37  ;;  %v91_v37 = vld [vmem:[%s2345_s4 + $0x28] sm:$0xff] }
 0x8f4   :  { %784 = vmatpush.msrb.mxu2 %v92_v42 }
 0x8f5   :  { %v720_v27 = vmul.f32 %v717_v40, %v715_v56 }
 0x8f6   :  { %785 = vmatpush.msrb.mxu2 %v91_v37 }
 0x8f7   :  { %v725_v62 = vadd.f32 %v722_v43, %v720_v27  ;;  %v2069_v43 = vperm.slane %v1660_v28, 7 }
 0x8f8   :  { %786 = vmatpush.msrb.mxu2 %v90_v3  ;;  %v2097_v3 = vld [vmem:[%s2342_s3 + $0x70] sm:$0xff] }
 0x8f9   :  { %1415 = vmatmul.msk.f32.gmra.mxu1 %vm165_vm3, %v725_v62  ;;  %872 = vmatpush.msra.mxu3 %v2097_v3 }
 0x8fa   :  { %787 = vmatpush.msrb.mxu2 %v89_v4  ;;  %v2103_v4 = vld [vmem:[%s2342_s3 + $0x60] sm:$0xff] }
 0x8fb   :  { %873 = vmatpush.msra.mxu3 %v2103_v4 }
 0x8fc   :  { %788 = vmatpush.msrb.mxu2 %v88_v5  ;;  %v2109_v5 = vld [vmem:[%s2342_s3 + $0x50] sm:$0xff] }
 0x8fd   :  { %874 = vmatpush.msra.mxu3 %v2109_v5 }
 0x8fe   :  { %789 = vmatpush.msrb.mxu2 %v87_v0  ;;  %v2115_v0 = vld [vmem:[%s2342_s3 + $0x40] sm:$0xff] }
 0x8ff   :  { %875 = vmatpush.msra.mxu3 %v2115_v0 }
 0x900   :  { %790 = vmatpush.msrb.mxu2 %v86_v1  ;;  %v1489_v1 = vpack.i.bf16 %v2103_v4, %v2097_v3 }
 0x96e   :  { %v750_v47 = vpop.f32.mrf.mxu1 }
 0x96f   :  { %v751_v7 = vadd.f32 %v750_v47, %v726_v6 }
 0x971   :  { %v756_v33 = vmul.f32 %v751_v7, %v751_v7 }
 0x973   :  { %v758_v8 = vmul.f32 %v756_v33, %v751_v7  ;;  %v1494_v33 = vpack.i.bf16 %v2115_v0, %v2109_v5 }
 0x975   :  { %v760_v16 = vmul.f32 0.044715, %v758_v8 }
 0x976   :  { %v753_v58 = vpop.f32.mrf.mxu1 }
 0x977   :  { %v762_v59 = vadd.f32 %v760_v16, %v751_v7  ;;  %v754_v9 = vadd.f32 %v753_v58, %v726_v6 }
 0x979   :  { %v757_v11 = vmul.f32 %v754_v9, %v754_v9  ;;  %v764_v18 = vmul.f32 0.7978846, %v762_v59 }
 0x97b   :  { %v759_v20 = vmul.f32 %v757_v11, %v754_v9  ;;  %1517 = vtanh.f32 %v764_v18 }
 0x97d   :  { %v761_v12 = vmul.f32 0.044715, %v759_v20 }
 0x97f   :  { %v763_v21 = vadd.f32 %v761_v12, %v754_v9 }
 0x981   :  { %v1518_v22 = vpop.eup %1517  ;;  %v765_v24 = vmul.f32 0.7978846, %v763_v21 }
 0x982   :  { %v768_v13 = vadd.f32 1.0, %v1518_v22 }
 0x983   :  { %1519 = vtanh.f32 %v765_v24 }
 0x984   :  { %v770_v31 = vmul.f32 0.5, %v768_v13 }
 0x986   :  { %v772_v32 = vmul.f32 %v770_v31, %v751_v7 }
 0x988   :  { %791 = vmatmul.f32.vlgmr.msrb.gmra.mxu2 %v772_v32 }
 0x989   :  { %v1520_v34 = vpop.eup %1519 }
 0x98a   :  { %v769_v40 = vadd.f32 1.0, %v1520_v34  ;;  %v849_v34 = vpop.permute.xlu2 %848 }
 0x98c   :  { %v771_v14 = vmul.f32 0.5, %v769_v40 }
 0x98e   :  { %v773_v41 = vmul.f32 %v771_v14, %v754_v9 }
 0x990   :  { %794 = vmatmul.f32.gmra.mxu2 %v773_v41 }
 0xa0b   :  { %v792_v23 = vpop.f32.mrf.mxu2 }
 0xa0c   :  { %v793_v48 = vadd.f32 %v792_v23, %v2069_v43 }
 0xa0e   :  { %v2073_v15 = vadd.f32 %v793_v48, %v1971_v50 }
 0xa10   :  { %v800_v49 = vsel %vm165_vm3, %v2073_v15, 0.0 }
 0xa11   :  { %801 = vadd.xlane.f32.xlu1 %v800_v49 }
 0xa13   :  { %v795_v55 = vpop.f32.mrf.mxu2 }
 0xa14   :  { %v796_v56 = vadd.f32 %v795_v55, %v2069_v43 }
 0xa16   :  { %v2079_v27 = vadd.f32 %v796_v56, %v1976_v57 }
 0xa18   :  { %v803_v62 = vsel %vm165_vm3, %v2079_v27, 0.0 }
 0xa19   :  { %804 = vadd.xlane.f32.xlu1 %v803_v62  ;;  %v2131_v62 = vld [vmem:[%s2341_s5] sm:$0xff] }
 0xa84   :  { %v802_v50 = vpop.xlane.xlu1 %801 }
 0xa85   :  { %v806_v38 = vmul.f32 %v802_v50, %v1688_v51  ;;  %v2134_v50 = vperm.slane %v2131_v62, 4 }
 0xa87   :  { %v808_v2 = vsub.f32 %v2073_v15, %v806_v38 }
 0xa89   :  { %v810_v35 = vmul.f32 %v808_v2, %v808_v2 }
 0xa8b   :  { %v812_v60 = vsel %vm165_vm3, %v810_v35, 0.0 }
 0xa8c   :  { %813 = vadd.xlane.f32.xlu0 %v812_v60  ;;  %v805_v57 = vpop.xlane.xlu1 %804 }
 0xa8d   :  { %v807_v61 = vmul.f32 %v805_v57, %v1688_v51 }
 0xa8f   :  { %v809_v42 = vsub.f32 %v2079_v27, %v807_v61 }
 0xa91   :  { %v811_v37 = vmul.f32 %v809_v42, %v809_v42 }
 0xa93   :  { %v815_v28 = vsel %vm165_vm3, %v811_v37, 0.0 }
 0xa94   :  { %816 = vadd.xlane.f32.xlu1 %v815_v28 }
 0xaff   :  { %v814_v6 = vpop.xlane.xlu0 %813 }
 0xb00   :  { %v818_v47 = vmul.f32 %v814_v6, %v1688_v51 }
 0xb02   :  { %v820_v7 = vadd.f32 1e-05, %v818_v47 }
 0xb04   :  { %1521 = vrsqrt.f32 %v820_v7  ;;  %vm828_vm6 = vweird.f32 %v820_v7 }
 0xb07   :  { %v817_v8 = vpop.xlane.xlu1 %816 }
 0xb08   :  { %v819_v16 = vmul.f32 %v817_v8, %v1688_v51 }
 0xb0a   :  { %v1522_v58 = vpop.eup %1521  ;;  %v821_v59 = vadd.f32 1e-05, %v819_v16 }
 0xb0b   :  { %v823_v9 = vmul.f32 %v1522_v58, %v820_v7  ;;  %vm829_vm5 = vweird.f32 %v1522_v58 }
 0xb0c   :  { %1523 = vrsqrt.f32 %v821_v59  ;;  %vm830_vm7 = vmor %vm828_vm6, %vm829_vm5  ;;  %vm838_vm9 = vweird.f32 %v821_v59 }
 0xb0d   :  { %v824_v11 = vmul.f32 %v1522_v58, %v823_v9 }
 0xb0f   :  { %v825_v18 = vmul.f32 0.5, %v824_v11 }
 0xb11   :  { %v826_v20 = vsub.f32 1.5, %v825_v18 }
 0xb12   :  { %v1524_v12 = vpop.eup %1523 }
 0xb13   :  { %v827_v21 = vmul.f32 %v1522_v58, %v826_v20  ;;  %v833_v22 = vmul.f32 %v1524_v12, %v821_v59  ;;  %vm839_vm8 = vweird.f32 %v1524_v12 }
 0xb14   :  { %vm840_vm10 = vmor %vm838_vm9, %vm839_vm8 }
 0xb15   :  { %v834_v24 = vmul.f32 %v1524_v12, %v833_v22  ;;  %v831_v13 = vsel %vm830_vm7, %v1522_v58, %v827_v21 }
 0xb16   :  { %v842_v31 = vmul.f32 %v831_v13, %v808_v2 }
 0xb17   :  { %v835_v32 = vmul.f32 0.5, %v834_v24 }
 0xb18   :  { %v845_v40 = vmul.f32 %v2084_v63, %v842_v31 }
 0xb19   :  { %v836_v14 = vsub.f32 1.5, %v835_v32 }
 0xb1a   :  { %v851_v41 = vadd.f32 %v849_v34, %v845_v40 }
 0xb1b   :  { %v837_v23 = vmul.f32 %v1524_v12, %v836_v14 }
 0xb1c   :  { %1416 = vmatmul.msk.f32.vlgmr.msra.gmra.mxu3 %vm165_vm3, %v851_v41 }
 0xb1d   :  { %v841_v48 = vsel %vm840_vm10, %v1524_v12, %v837_v23 }
 0xb1e   :  { %v843_v49 = vmul.f32 %v841_v48, %v809_v42 }
 0xb20   :  { %v846_v55 = vmul.f32 %v2084_v63, %v843_v49 }
 0xb22   :  { %v852_v56 = vadd.f32 %v849_v34, %v846_v55 }
 0xb24   :  { %1417 = vmatmul.msk.f32.gmra.mxu3 %vm165_vm3, %v852_v56 }
 0xb9f   :  { %v877_v38 = vpop.f32.mrf.mxu3 }
 0xba0   :  { %v2137_v2 = vadd.f32 %v877_v38, %v2134_v50 }
 0xba2   :  { %885 = vrot.lane.b32.xlu1 %v2137_v2, %s1549_s24 }
 0xba7   :  { %v880_v35 = vpop.f32.mrf.mxu3 }
 0xba8   :  { %v2142_v60 = vadd.f32 %v880_v35, %v2134_v50 }
 0xbaa   :  { %887 = vrot.lane.b32.xlu2 %v2142_v60, %s1549_s24 }
 0xc04   :  { %v888_v61 = vpop.permute.xlu2 %887 }
 0xc14   :  { %v886_v57 = vpop.permute.xlu1 %885 }
 0xc15   :  { %891 = vxpose.xlu2.b32.start [1/2] (short) (narrow) %v886_v57, 32 }
 0xc1d   :  { %892 = vxpose.xlu2.b32.end [2/2] (short) (narrow) %v888_v61, 32 }
 0xcae   :  { %v907_v42 = vpop.trf.xlu2 }
 0xcb6   :  { %v908_v37 = vpop.trf.xlu2 }
 0xcb7   :  { %953 = vrot.lane.b32.xlu1 %v908_v37, %s1552_s13  ;;  %941 = vrot.lane.b32.xlu2 %v908_v37, %s1553_s14 }
 0xcb8   :  { %929 = vrot.lane.b32.xlu0 %v908_v37, %s1550_s9 }
 0xcbe   :  { %v909_v28 = vpop.trf.xlu2 }
 0xcbf   :  { %943 = vrot.lane.b32.xlu1 %v909_v28, %s1553_s14 }
 0xcc0   :  { %927 = vrot.lane.b32.xlu0 %v907_v42, %s1550_s9 }
 0xcc6   :  { %v910_v6 = vpop.trf.xlu2 }
 0xcc7   :  { %955 = vrot.lane.b32.xlu1 %v909_v28, %s1552_s13 }
 0xcc8   :  { %931 = vrot.lane.b32.xlu0 %v909_v28, %s1550_s9 }
 0xccf   :  { %933 = vrot.lane.b32.xlu1 %v910_v6, %s1550_s9 }
 0xcd0   :  { %939 = vrot.lane.b32.xlu0 %v907_v42, %s1553_s14 }
 0xcd7   :  { %945 = vrot.lane.b32.xlu1 %v910_v6, %s1553_s14 }
 0xcdf   :  { %957 = vrot.lane.b32.xlu1 %v910_v6, %s1552_s13 }
 0xce7   :  { %951 = vrot.lane.b32.xlu1 %v907_v42, %s1552_s13 }
 0xd11   :  { %v942_v21 = vpop.permute.xlu2 %941 }
 0xd29   :  { %v954_v47 = vpop.permute.xlu1 %953 }
 0xd2a   :  { %v930_v8 = vpop.permute.xlu0 %929 }
 0xd2b   :  { %v964_v20 = vsel %vm254_vm11, %v908_v37, %v930_v8  ;;  %v1057_v37 = vmul.f32 %v2137_v2, %v1914_v25  ;;  %v1052_v25 = vmul.f32 %v2142_v60, %v1951_v53  ;;  %v1051_v8 = vmul.f32 %v2137_v2, %v1949_v52 }
 0xd2c   :  { %v968_v24 = vsel %vm165_vm3, %v964_v20, %v942_v21 }
 0xd2d   :  { %v972_v14 = vsel %vm259_vm12, %v968_v24, %v954_v47 }
 0xd2e   :  { %v976_v48 = vmul.f32 %v972_v14, %v1801_v19 }
 0xd31   :  { %v944_v7 = vpop.permute.xlu1 %943 }
 0xd32   :  { %v928_v58 = vpop.permute.xlu0 %927 }
 0xd33   :  { %v963_v49 = vsel %vm254_vm11, %v907_v42, %v928_v58 }
 0xd39   :  { %v956_v16 = vpop.permute.xlu1 %955 }
 0xd3a   :  { %v932_v9 = vpop.permute.xlu0 %931 }
 0xd3b   :  { %v965_v18 = vsel %vm254_vm11, %v909_v28, %v932_v9 }
 0xd3c   :  { %v969_v12 = vsel %vm165_vm3, %v965_v18, %v944_v7 }
 0xd3d   :  { %v973_v34 = vsel %vm259_vm12, %v969_v12, %v956_v16 }
 0xd3e   :  { %v977_v41 = vmul.f32 %v973_v34, %v1794_v17 }
 0xd41   :  { %v934_v59 = vpop.permute.xlu1 %933 }
 0xd42   :  { %v966_v22 = vsel %vm254_vm11, %v910_v6, %v934_v59  ;;  %v940_v23 = vpop.permute.xlu0 %939  ;;  %v1053_v6 = vmul.f32 %v2137_v2, %v1936_v44 }
 0xd43   :  { %v967_v55 = vsel %vm165_vm3, %v963_v49, %v940_v23 }
 0xd49   :  { %v946_v11 = vpop.permute.xlu1 %945 }
 0xd4a   :  { %v970_v13 = vsel %vm165_vm3, %v966_v22, %v946_v11 }
 0xd51   :  { %v958_v31 = vpop.permute.xlu1 %957 }
 0xd52   :  { %v974_v32 = vsel %vm259_vm12, %v970_v13, %v958_v31 }
 0xd53   :  { %v978_v40 = vmul.f32 %v974_v32, %v1784_v10 }
 0xd55   :  { %995 = vmatpush.msrb.mxu0 %v978_v40 }
 0xd57   :  { %996 = vmatpush.msrb.mxu0 %v977_v41 }
 0xd59   :  { %v952_v56 = vpop.permute.xlu1 %951  ;;  %997 = vmatpush.msrb.mxu0 %v976_v48 }
 0xd5a   :  { %v971_v38 = vsel %vm259_vm12, %v967_v55, %v952_v56 }
 0xd5b   :  { %v975_v35 = vmul.f32 %v971_v38, %v1811_v26  ;;  %v1058_v26 = vmul.f32 %v2142_v60, %v1920_v30  ;;  %v1055_v30 = vmul.f32 %v2137_v2, %v1926_v36 }
 0xd5d   :  { %998 = vmatpush.msrb.mxu0 %v975_v35  ;;  %v1469_v28 = vpack.i.bf16 %v1057_v37, %v1058_v26 }
 0xd5e   :  { %1418 = vmatmul.msk.f32.vlgmr.msrb.gmra.mxu0 %vm165_vm3, %v2137_v2 }
 0xd66   :  { %1419 = vmatmul.msk.f32.gmra.mxu0 %vm165_vm3, %v2142_v60 }
 0xddb   :  { %v1000_v10 = vpop.f32.mrf.mxu0 }
 0xddc   :  { %v1001_v17 = vadd.f32 %v1000_v10, %v1824_v45  ;;  %v1054_v45 = vmul.f32 %v2142_v60, %v1938_v46  ;;  %v1484_v46 = vpack.i.bf16 %v1051_v8, %v1052_v25  ;;  %v85_v25 = vld [vmem:[%s2342_s3 + $0x78] sm:$0xff] }
 0xddd   :  { %1244 = vmatpush.msra.mxu1 %v85_v25  ;;  %v81_v8 = vld [vmem:[%s2342_s3 + $0x58] sm:$0xff] }
 0xdde   :  { %v1006_v19 = vsel %vm134_vm0, %v1001_v17, -inf  ;;  %v1479_v47 = vpack.i.bf16 %v1053_v6, %v1054_v45 }
 0xddf   :  { %1007 = vmax.xlane.f32.xlu0 %v1006_v19 }
 0xde3   :  { %v1003_v57 = vpop.f32.mrf.mxu0 }
 0xde4   :  { %v1004_v61 = vadd.f32 %v1003_v57, %v1830_v54  ;;  %v1056_v54 = vmul.f32 %v2142_v60, %v1929_v39 }
 0xde6   :  { %v1009_v42 = vsel %vm134_vm0, %v1004_v61, -inf  ;;  %v1474_v7 = vpack.i.bf16 %v1055_v30, %v1056_v54 }
 0xde7   :  { %1010 = vmax.xlane.f32.xlu1 %v1009_v42 }
 0xdf3   :  { %1470 = vrot.lane.b32.xlu0 %v1469_v28, %s1551_s12 }
 0xdfb   :  { %1480 = vrot.lane.b32.xlu0 %v1479_v47, %s1551_s12 }
 0xe00   :  { %1475 = vrot.lane.b32.xlu1 %v1474_v7, %s1551_s12  ;;  %v83_v7 = vld [vmem:[%s2342_s3 + $0x68] sm:$0xff] }
 0xe01   :  { %1245 = vmatpush.msra.mxu1 %v83_v7 }
 0xe03   :  { %1485 = vrot.lane.b32.xlu0 %v1484_v46, %s1551_s12  ;;  %1246 = vmatpush.msra.mxu1 %v81_v8 }
 0xe08   :  { %1490 = vrot.lane.b32.xlu1 %v1489_v1, %s1553_s14 }
 0xe0b   :  { %1495 = vrot.lane.b32.xlu0 %v1494_v33, %s1553_s14 }
 0xe10   :  { %1137 = vrot.lane.b32.xlu1 %v2134_v50, %s1553_s14 }
 0xe52   :  { %v1008_v36 = vpop.xlane.xlu0 %1007 }
 0xe53   :  { %v1012_v39 = vsub.f32 %v1001_v17, %v1008_v36 }
 0xe55   :  { %v1014_v44 = vmul.f32 1.442695, %v1012_v39  ;;  %v117_v39 = vld [vmem:[%s2345_s4 + $0xf8] sm:$0xff] }
 0xe56   :  { %1277 = vmatpush.msra.mxu2 %v117_v39 }
 0xe57   :  { %1525 = vpow2.f32 %v1014_v44  ;;  %v116_v44 = vld [vmem:[%s2345_s4 + $0xf0] sm:$0xff] }
 0xe58   :  { %1278 = vmatpush.msra.mxu2 %v116_v44 }
 0xe5a   :  { %v1011_v52 = vpop.xlane.xlu1 %1010 }
 0xe5b   :  { %v1013_v53 = vsub.f32 %v1004_v61, %v1011_v52 }
 0xe5d   :  { %v1526_v2 = vpop.eup %1525  ;;  %v1016_v60 = vmul.f32 1.442695, %v1013_v53  ;;  %v115_v53 = vld [vmem:[%s2345_s4 + $0xe8] sm:$0xff] }
 0xe5e   :  { %1420 = vmatmul.msk.f32.vlgmr.msrb.gmra.mxu1 %vm134_vm0, %v1526_v2  ;;  %1279 = vmatpush.msra.mxu2 %v115_v53 }
 0xe5f   :  { %1527 = vpow2.f32 %v1016_v60 }
 0xe65   :  { %v1528_v3 = vpop.eup %1527  ;;  %v1471_v4 = vpop.permute.xlu0 %1470 }
 0xe66   :  { %v1472_v1 = vunpack.i.l.bf16 %v1471_v4  ;;  %1421 = vmatmul.msk.f32.gmra.mxu1 %vm134_vm0, %v1528_v3  ;;  %v1473_v5 = vunpack.i.h.bf16 %v1471_v4 }
 0xe68   :  { %1105 = vmatpush.msrb.mxu3 %v1472_v1 }
 0xe6a   :  { %1106 = vmatpush.msrb.mxu3 %v1473_v5 }
 0xe6d   :  { %v1481_v0 = vpop.permute.xlu0 %1480 }
 0xe6e   :  { %v1482_v58 = vunpack.i.l.bf16 %v1481_v0  ;;  %v1483_v9 = vunpack.i.h.bf16 %v1481_v0 }
 0xe72   :  { %v1476_v33 = vpop.permute.xlu1 %1475 }
 0xe73   :  { %v1477_v50 = vunpack.i.l.bf16 %v1476_v33  ;;  %v1478_v16 = vunpack.i.h.bf16 %v1476_v33 }
 0xe75   :  { %1107 = vmatpush.msrb.mxu3 %v1477_v50  ;;  %v1486_v59 = vpop.permute.xlu0 %1485 }
 0xe76   :  { %v1487_v11 = vunpack.i.l.bf16 %v1486_v59  ;;  %v1488_v18 = vunpack.i.h.bf16 %v1486_v59 }
 0xe77   :  { %1108 = vmatpush.msrb.mxu3 %v1478_v16 }
 0xe79   :  { %1109 = vmatpush.msrb.mxu3 %v1482_v58 }
 0xe7a   :  { %v1491_v20 = vpop.permute.xlu1 %1490 }
 0xe7b   :  { %1110 = vmatpush.msrb.mxu3 %v1483_v9  ;;  %v1493_v21 = vunpack.i.h.bf16 %v1491_v20  ;;  %v1492_v22 = vunpack.i.l.bf16 %v1491_v20 }
 0xe7d   :  { %1111 = vmatpush.msrb.mxu3 %v1487_v11  ;;  %v1496_v12 = vpop.permute.xlu0 %1495  ;;  %1158 = vmatpush.msra.mxu0 %v1492_v22 }
 0xe7e   :  { %v1497_v24 = vunpack.i.l.bf16 %v1496_v12  ;;  %v1498_v13 = vunpack.i.h.bf16 %v1496_v12 }
 0xe7f   :  { %1112 = vmatpush.msrb.mxu3 %v1488_v18  ;;  %1159 = vmatpush.msra.mxu0 %v1493_v21 }
 0xe81   :  { %1160 = vmatpush.msra.mxu0 %v1497_v24 }
 0xe82   :  { %v1138_v56 = vpop.permute.xlu1 %1137 }
 0xe83   :  { %1161 = vmatpush.msra.mxu0 %v1498_v13 }
 0xedb   :  { %v1041_v31 = vpop.f32.mrf.mxu1 }
 0xedc   :  { %v1042_v32 = vadd.f32 1e-20, %v1041_v31 }
 0xede   :  { %1529 = vrcp.f32 %v1042_v32 }
 0xee3   :  { %v1044_v34 = vpop.f32.mrf.mxu1 }
 0xee4   :  { %v1530_v40 = vpop.eup %1529  ;;  %v1045_v14 = vadd.f32 1e-20, %v1044_v34 }
 0xee5   :  { %v1049_v41 = vmul.f32 %v1530_v40, %v1526_v2  ;;  %v114_v40 = vld [vmem:[%s2345_s4 + $0xe0] sm:$0xff] }
 0xee6   :  { %1531 = vrcp.f32 %v1045_v14  ;;  %1280 = vmatpush.msra.mxu2 %v114_v40  ;;  %v113_v14 = vld [vmem:[%s2345_s4 + $0xd8] sm:$0xff] }
 0xee7   :  { %1422 = vmatmul.msk.f32.vlgmr.msrb.gmra.mxu3 %vm134_vm0, %v1049_v41  ;;  %v112_v41 = vld [vmem:[%s2345_s4 + $0xd0] sm:$0xff] }
 0xee8   :  { %1281 = vmatpush.msra.mxu2 %v113_v14 }
 0xeea   :  { %1282 = vmatpush.msra.mxu2 %v112_v41 }
 0xeec   :  { %v1532_v23 = vpop.eup %1531 }
 0xeed   :  { %v1050_v48 = vmul.f32 %v1532_v23, %v1528_v3  ;;  %v111_v23 = vld [vmem:[%s2345_s4 + $0xc8] sm:$0xff] }
 0xeee   :  { %1283 = vmatpush.msra.mxu2 %v111_v23 }
 0xeef   :  { %1423 = vmatmul.msk.f32.gmra.mxu3 %vm134_vm0, %v1050_v48  ;;  %v110_v48 = vld [vmem:[%s2345_s4 + $0xc0] sm:$0xff] }
 0xef0   :  { %1284 = vmatpush.msra.mxu2 %v110_v48 }
 0xf6a   :  { %v1114_v49 = vpop.f32.mrf.mxu3 }
 0xf6b   :  { %1424 = vmatmul.msk.f32.vlgmr.msra.gmra.mxu0 %vm165_vm3, %v1114_v49  ;;  %v109_v49 = vld [vmem:[%s2345_s4 + $0xb8] sm:$0xff] }
 0xf6c   :  { %1285 = vmatpush.msra.mxu2 %v109_v49 }
 0xf72   :  { %v1117_v55 = vpop.f32.mrf.mxu3 }
 0xf73   :  { %1425 = vmatmul.msk.f32.gmra.mxu0 %vm165_vm3, %v1117_v55  ;;  %v108_v55 = vld [vmem:[%s2345_s4 + $0xb0] sm:$0xff] }
 0xf74   :  { %1286 = vmatpush.msra.mxu2 %v108_v55 }
 0xfe8   :  { %v1163_v38 = vpop.f32.mrf.mxu0 }
 0xfe9   :  { %v1164_v35 = vadd.f32 %v1163_v38, %v1138_v56  ;;  %v106_v38 = vld [vmem:[%s2345_s4 + $0xa0] sm:$0xff] }
 0xfeb   :  { %v2219_v10 = vadd.f32 %v1164_v35, %v2073_v15  ;;  %v105_v35 = vld [vmem:[%s2345_s4 + $0x98] sm:$0xff] }
 0xfed   :  { %v1171_v17 = vsel %vm165_vm3, %v2219_v10, 0.0 }
 0xfee   :  { %1172 = vadd.xlane.f32.xlu0 %v1171_v17  ;;  %v104_v17 = vld [vmem:[%s2345_s4 + $0x90] sm:$0xff] }
 0xff0   :  { %v1166_v19 = vpop.f32.mrf.mxu0 }
 0xff1   :  { %v1167_v57 = vadd.f32 %v1166_v19, %v1138_v56  ;;  %v107_v56 = vld [vmem:[%s2345_s4 + $0xa8] sm:$0xff] }
 0xff2   :  { %1287 = vmatpush.msra.mxu2 %v107_v56  ;;  %v103_v19 = vld [vmem:[%s2345_s4 + $0x88] sm:$0xff] }
 0xff3   :  { %v2224_v61 = vadd.f32 %v1167_v57, %v2079_v27  ;;  %v102_v57 = vld [vmem:[%s2345_s4 + $0x80] sm:$0xff] }
 0xff4   :  { %1288 = vmatpush.msra.mxu2 %v106_v38 }
 0xff5   :  { %v1174_v42 = vsel %vm165_vm3, %v2224_v61, 0.0 }
 0xff6   :  { %1175 = vadd.xlane.f32.xlu1 %v1174_v42  ;;  %1289 = vmatpush.msra.mxu2 %v105_v35  ;;  %v1225_v42 = vperm.slane %v2131_v62, 6 }
 0xff8   :  { %1290 = vmatpush.msra.mxu2 %v104_v17 }
 0xffa   :  { %1291 = vmatpush.msra.mxu2 %v103_v19 }
 0xffc   :  { %1292 = vmatpush.msra.mxu2 %v102_v57 }
0x100f   :  { %1215 = vrot.lane.b32.xlu1 %v2084_v63, %s1551_s12 }
0x1061   :  { %v1173_v26 = vpop.xlane.xlu0 %1172 }
0x1062   :  { %v1177_v15 = vmul.f32 %v1173_v26, %v1688_v51 }
0x1064   :  { %v1179_v37 = vsub.f32 %v2219_v10, %v1177_v15 }
0x1066   :  { %v1181_v28 = vmul.f32 %v1179_v37, %v1179_v37 }
0x1068   :  { %v1183_v45 = vsel %vm165_vm3, %v1181_v28, 0.0 }
0x1069   :  { %1184 = vadd.xlane.f32.xlu2 %v1183_v45  ;;  %v1176_v6 = vpop.xlane.xlu1 %1175 }
0x106a   :  { %v1178_v27 = vmul.f32 %v1176_v6, %v1688_v51 }
0x106c   :  { %v1180_v47 = vsub.f32 %v2224_v61, %v1178_v27 }
0x106e   :  { %v1182_v54 = vmul.f32 %v1180_v47, %v1180_v47 }
0x1070   :  { %v1186_v30 = vsel %vm165_vm3, %v1182_v54, 0.0 }
0x1071   :  { %1187 = vadd.xlane.f32.xlu0 %v1186_v30 }
0x1081   :  { %1274 = vrot.lane.b32.xlu2 %v2069_v43, %s1549_s24  ;;  %v79_v43 = vld [vmem:[%s2342_s3 + $0x48] sm:$0xff]  ;;  %v1216_v9 = vpop.permute.xlu1 %1215 }
0x1082   :  { %1247 = vmatpush.msra.mxu1 %v79_v43 }
0x1085   :  { %1220 = vrot.lane.b32.xlu0 %v2084_v63, %s1553_s14 }
0x10dc   :  { %v1185_v63 = vpop.xlane.xlu2 %1184 }
0x10dd   :  { %v1189_v46 = vmul.f32 %v1185_v63, %v1688_v51 }
0x10df   :  { %v1191_v36 = vadd.f32 1e-05, %v1189_v46 }
0x10e1   :  { %1533 = vrsqrt.f32 %v1191_v36  ;;  %vm1199_vm11 = vweird.f32 %v1191_v36 }
0x10e4   :  { %v1188_v52 = vpop.xlane.xlu0 %1187 }
0x10e5   :  { %v1190_v2 = vmul.f32 %v1188_v52, %v1688_v51 }
0x10e7   :  { %v1534_v60 = vpop.eup %1533  ;;  %v1192_v3 = vadd.f32 1e-05, %v1190_v2  ;;  %v1275_v2 = vpop.permute.xlu2 %1274 }
0x10e8   :  { %v1194_v4 = vmul.f32 %v1534_v60, %v1191_v36  ;;  %vm1200_vm0 = vweird.f32 %v1534_v60 }
0x10e9   :  { %1535 = vrsqrt.f32 %v1192_v3  ;;  %vm1201_vm12 = vmor %vm1199_vm11, %vm1200_vm0  ;;  %vm1209_vm14 = vweird.f32 %v1192_v3 }
0x10ea   :  { %v1195_v1 = vmul.f32 %v1534_v60, %v1194_v4 }
0x10ec   :  { %v1196_v5 = vmul.f32 0.5, %v1195_v1 }
0x10ee   :  { %v1197_v0 = vsub.f32 1.5, %v1196_v5 }
0x10ef   :  { %v1536_v33 = vpop.eup %1535 }
0x10f0   :  { %v1204_v50 = vmul.f32 %v1536_v33, %v1192_v3  ;;  %v1198_v16 = vmul.f32 %v1534_v60, %v1197_v0  ;;  %vm1210_vm13 = vweird.f32 %v1536_v33 }
0x10f1   :  { %vm1211_vm15 = vmor %vm1209_vm14, %vm1210_vm13 }
0x10f2   :  { %v1205_v58 = vmul.f32 %v1536_v33, %v1204_v50  ;;  %v1202_v59 = vsel %vm1201_vm12, %v1534_v60, %v1198_v16 }
0x10f3   :  { %v1213_v11 = vmul.f32 %v1202_v59, %v1179_v37 }
0x10f4   :  { %v1206_v18 = vmul.f32 0.5, %v1205_v58 }
0x10f5   :  { %v1218_v20 = vmul.f32 %v1216_v9, %v1213_v11 }
0x10f6   :  { %v1207_v12 = vsub.f32 1.5, %v1206_v18 }
0x10f7   :  { %v1221_v21 = vpop.permute.xlu0 %1220 }
0x10f8   :  { %v1208_v22 = vmul.f32 %v1536_v33, %v1207_v12  ;;  %v1223_v24 = vadd.f32 %v1221_v21, %v1218_v20 }
0x10fa   :  { %v1212_v13 = vsel %vm1211_vm15, %v1536_v33, %v1208_v22  ;;  %1426 = vmatmul.msk.f32.vlgmr.msra.gmra.mxu1 %vm165_vm3, %v1223_v24  ;;  %v1359_v22 = vld [vmem:[%s2346_s7 + $0x10] sm:$0xff] }
0x10fb   :  { %v1214_v31 = vmul.f32 %v1212_v13, %v1180_v47  ;;  %v1358_v13 = vld [vmem:[%s2346_s7 + $0x8] sm:$0xff] }
0x10fd   :  { %v1219_v32 = vmul.f32 %v1216_v9, %v1214_v31 }
0x10ff   :  { %v1224_v34 = vadd.f32 %v1221_v21, %v1219_v32  ;;  %v1360_v21 = vld [vmem:[%s2346_s7 + $0x18] sm:$0xff] }
0x1100   :  { %1379 = vmatpush.msra.mxu3 %v1360_v21 }
0x1102   :  { %1427 = vmatmul.msk.f32.gmra.mxu1 %vm165_vm3, %v1224_v34  ;;  %1380 = vmatpush.msra.mxu3 %v1359_v22 }
0x1104   :  { %1381 = vmatpush.msra.mxu3 %v1358_v13 }
0x1177   :  { %v1249_v26 = vpop.f32.mrf.mxu1 }
0x1178   :  { %v1250_v15 = vadd.f32 %v1249_v26, %v1225_v42 }
0x117a   :  { %v1255_v37 = vmul.f32 %v1250_v15, %v1250_v15 }
0x117c   :  { %v1257_v28 = vmul.f32 %v1255_v37, %v1250_v15 }
0x117e   :  { %v1259_v45 = vmul.f32 0.044715, %v1257_v28 }
0x117f   :  { %v1252_v6 = vpop.f32.mrf.mxu1 }
0x1180   :  { %v1261_v27 = vadd.f32 %v1259_v45, %v1250_v15  ;;  %v1253_v47 = vadd.f32 %v1252_v6, %v1225_v42 }
0x1182   :  { %v1263_v54 = vmul.f32 0.7978846, %v1261_v27  ;;  %v1256_v30 = vmul.f32 %v1253_v47, %v1253_v47 }
0x1184   :  { %1537 = vtanh.f32 %v1263_v54  ;;  %v1258_v25 = vmul.f32 %v1256_v30, %v1253_v47 }
0x1186   :  { %v1260_v7 = vmul.f32 0.044715, %v1258_v25 }
0x1188   :  { %v1262_v8 = vadd.f32 %v1260_v7, %v1253_v47 }
0x118a   :  { %v1538_v43 = vpop.eup %1537  ;;  %v1264_v63 = vmul.f32 0.7978846, %v1262_v8 }
0x118b   :  { %v1267_v46 = vadd.f32 1.0, %v1538_v43 }
0x118c   :  { %1539 = vtanh.f32 %v1264_v63 }
0x118d   :  { %v1269_v36 = vmul.f32 0.5, %v1267_v46 }
0x118f   :  { %v1271_v62 = vmul.f32 %v1269_v36, %v1250_v15 }
0x1191   :  { %1293 = vmatmul.f32.vlgmr.msra.gmra.mxu2 %v1271_v62 }
0x1192   :  { %v1540_v39 = vpop.eup %1539 }
0x1193   :  { %v1268_v44 = vadd.f32 1.0, %v1540_v39 }
0x1195   :  { %v1270_v52 = vmul.f32 0.5, %v1268_v44 }
0x1197   :  { %v1272_v53 = vmul.f32 %v1270_v52, %v1253_v47 }
0x1199   :  { %1296 = vmatmul.f32.gmra.mxu2 %v1272_v53 }
0x1214   :  { %v1294_v60 = vpop.f32.mrf.mxu2 }
0x1215   :  { %v1295_v3 = vadd.f32 %v1294_v60, %v1275_v2 }
0x1217   :  { %v1300_v4 = vadd.f32 %v1295_v3, %v2219_v10 }
0x1219   :  { %v1302_v1 = vsel %vm165_vm3, %v1300_v4, 0.0 }
0x121a   :  { %1303 = vadd.xlane.f32.xlu1 %v1302_v1 }
0x121c   :  { %v1297_v5 = vpop.f32.mrf.mxu2 }
0x121d   :  { %v1298_v0 = vadd.f32 %v1297_v5, %v1275_v2 }
0x121f   :  { %v1301_v33 = vadd.f32 %v1298_v0, %v2224_v61 }
0x1221   :  { %v1305_v50 = vsel %vm165_vm3, %v1301_v33, 0.0 }
0x1222   :  { %1306 = vadd.xlane.f32.xlu0 %v1305_v50 }
0x1236   :  { %1347 = vrot.lane.b32.xlu0 %v1663_v29, %s1549_s24 }
0x128d   :  { %v1304_v16 = vpop.xlane.xlu1 %1303 }
0x128e   :  { %v1308_v58 = vmul.f32 %v1304_v16, %v1688_v51 }
0x1290   :  { %v1310_v59 = vsub.f32 %v1300_v4, %v1308_v58 }
0x1292   :  { %v1312_v9 = vmul.f32 %v1310_v59, %v1310_v59 }
0x1294   :  { %v1314_v10 = vsel %vm165_vm3, %v1312_v9, 0.0 }
0x1295   :  { %v1307_v11 = vpop.xlane.xlu0 %1306  ;;  %1315 = vadd.xlane.f32.xlu2 %v1314_v10 }
0x1296   :  { %v1309_v18 = vmul.f32 %v1307_v11, %v1688_v51 }
0x1298   :  { %v1311_v20 = vsub.f32 %v1301_v33, %v1309_v18 }
0x129a   :  { %v1313_v12 = vmul.f32 %v1311_v20, %v1311_v20 }
0x129c   :  { %v1317_v61 = vsel %vm165_vm3, %v1313_v12, 0.0 }
0x129d   :  { %1318 = vadd.xlane.f32.xlu1 %v1317_v61 }
0x12b6   :  { %1352 = vrot.lane.b32.xlu1 %v1663_v29, %s1551_s12  ;;  %v1357_v29 = vld [vmem:[%s2346_s7] sm:$0xff] }
0x12b7   :  { %1382 = vmatpush.msra.mxu3 %v1357_v29 }
0x1308   :  { %v1316_v24 = vpop.xlane.xlu2 %1315 }
0x1309   :  { %v1320_v31 = vmul.f32 %v1316_v24, %v1688_v51 }
0x130b   :  { %v1322_v32 = vadd.f32 1e-05, %v1320_v31 }
0x130d   :  { %1541 = vrsqrt.f32 %v1322_v32  ;;  %vm1330_vm2 = vweird.f32 %v1322_v32 }
0x1310   :  { %v1319_v34 = vpop.xlane.xlu1 %1318 }
0x1311   :  { %v1321_v40 = vmul.f32 %v1319_v34, %v1688_v51  ;;  %v1348_v51 = vpop.permute.xlu0 %1347 }
0x1313   :  { %v1542_v14 = vpop.eup %1541  ;;  %v1323_v41 = vadd.f32 1e-05, %v1321_v40 }
0x1314   :  { %v1325_v23 = vmul.f32 %v1542_v14, %v1322_v32  ;;  %vm1331_vm1 = vweird.f32 %v1542_v14 }
0x1315   :  { %1543 = vrsqrt.f32 %v1323_v41  ;;  %vm1332_vm4 = vmor %vm1330_vm2, %vm1331_vm1  ;;  %vm1340_vm6 = vweird.f32 %v1323_v41 }
0x1316   :  { %v1326_v48 = vmul.f32 %v1542_v14, %v1325_v23 }
0x1318   :  { %v1327_v49 = vmul.f32 0.5, %v1326_v48 }
0x131a   :  { %v1328_v55 = vsub.f32 1.5, %v1327_v49 }
0x131b   :  { %v1544_v56 = vpop.eup %1543 }
0x131c   :  { %v1335_v38 = vmul.f32 %v1544_v56, %v1323_v41  ;;  %v1329_v35 = vmul.f32 %v1542_v14, %v1328_v55  ;;  %vm1341_vm5 = vweird.f32 %v1544_v56 }
0x131d   :  { %vm1342_vm7 = vmor %vm1340_vm6, %vm1341_vm5 }
0x131e   :  { %v1336_v17 = vmul.f32 %v1544_v56, %v1335_v38  ;;  %v1333_v57 = vsel %vm1332_vm4, %v1542_v14, %v1329_v35 }
0x131f   :  { %v1344_v26 = vmul.f32 %v1333_v57, %v1310_v59 }
0x1320   :  { %v1337_v19 = vmul.f32 0.5, %v1336_v17 }
0x1321   :  { %v1350_v28 = vmul.f32 %v1348_v51, %v1344_v26 }
0x1322   :  { %v1338_v42 = vsub.f32 1.5, %v1337_v19 }
0x1324   :  { %v1339_v15 = vmul.f32 %v1544_v56, %v1338_v42 }
0x1326   :  { %v1343_v37 = vsel %vm1342_vm7, %v1544_v56, %v1339_v15 }
0x1327   :  { %v1345_v6 = vmul.f32 %v1343_v37, %v1311_v20 }
0x1328   :  { %v1353_v45 = vpop.permute.xlu1 %1352 }
0x1329   :  { %v1355_v27 = vadd.f32 %v1353_v45, %v1350_v28  ;;  %v1351_v47 = vmul.f32 %v1348_v51, %v1345_v6 }
0x132b   :  { %1428 = vmatmul.msk.f32.vlgmr.msra.gmra.mxu3 %vm165_vm3, %v1355_v27  ;;  %v1356_v54 = vadd.f32 %v1353_v45, %v1351_v47 }
0x1333   :  { %1429 = vmatmul.msk.f32.gmra.mxu3 %vm165_vm3, %v1356_v54 }
0x13ae   :  { %v1384_v30 = vpop.f32.mrf.mxu3 }
0x13af   :  { %1390 = vst [vmem:[%s2347_s8] sm:$0xff] %v1384_v30 }
0x13b6   :  { %v1387_v25 = vpop.f32.mrf.mxu3 }
0x13b7   :  { %1391 = vst [vmem:[%s2347_s8 + $0x8] sm:$0xff] %v1387_v25 }

</bundles_post_ra>
